<compile_context>
chip_gen: v7x
topology: tpu7x:2x2x1
jax: 0.10.0
libtpu: 0.0.40
codegen_flags: <defaults>
</compile_context>

<pallas_src>
import numpy as np
import jax
import jax.numpy as jnp
from jax import lax
from jax.experimental import pallas as pl
from jax.experimental.pallas import tpu as pltpu


# ----------------------------------------------------------------------------
# Fused kernel (plane-decomposed layout): unpool + DenseBlock + residual
# ----------------------------------------------------------------------------
def _make_kernel(H, W, B, C, F):
    HW = H * W
    L = B * HW                       # lane axis: (image, i, j) at ORIGINAL resolution
    R_in, R_out = 4 * C, 4 * F       # sublane rows: channel-major, (a,b)-parity minor
    widths = [4 * C, 4 * (C + F), 4 * (C + 2 * F), 4 * (C + 3 * F), 4 * (C + 4 * F)]

    def kernel(x_ref, wup_ref, btc_ref, w1_ref, w2_ref, w3_ref, w4_ref, w5_ref,
               bias_ref, bns_ref, bnh_ref, o_ref, cat_ref):
        # ---- per-pixel boundary masks over the (b, i, j) lane axis ---------------------
        # float-only index math (exact for L < ~2**21) avoids integer-div lowering.
        q = lax.broadcasted_iota(jnp.int32, (1, L), 1).astype(jnp.float32)
        rows = jnp.floor((q + 0.5) * (1.0 / W))        # = b*H + i
        col = q - rows * W                             # = j
        img = jnp.floor((rows + 0.5) * (1.0 / H))      # = b
        row = rows - img * H                           # = i
        m_top = jnp.where(row >= 0.5, 1.0, 0.0)        # i > 0     (needed for si = -1)
        m_bot = jnp.where(row <= H - 1.5, 1.0, 0.0)    # i < H-1   (needed for si = +1)
        m_lft = jnp.where(col >= 0.5, 1.0, 0.0)        # j > 0     (sj = -1)
        m_rgt = jnp.where(col <= W - 1.5, 1.0, 0.0)    # j < W-1   (sj = +1)
        row_mask = {-1: m_top, 1: m_bot}
        col_mask = {-1: m_lft, 1: m_rgt}

        # ---- unpool (ConvTranspose2d 2x2 / s2): ONE lane-dense matmul -------------------
        # weight rows are pre-ordered (channel-major, sub-pixel-parity minor) so the
        # result is already in the cat layout: no in-kernel interleave at all.
        u = jnp.dot(wup_ref[...], x_ref[...],
                    preferred_element_type=jnp.float32) + btc_ref[...]     # (4C, L) f32
        cat_ref[0:R_in, :] = u.astype(jnp.bfloat16)

        def bn_relu(k):
            w_k = widths[k]
            a = cat_ref[0:w_k, :].astype(jnp.float32)
            return jnp.maximum(a * bns_ref[0:w_k, k:k + 1] + bnh_ref[0:w_k, k:k + 1], 0.0)

        def shift_lanes(a, off):
            # result[:, p] = a[:, (p + off) % L]  (wrapped columns are always masked)
            off = off % L
            if off == 0:
                return a
            return jnp.concatenate([a[:, off:], a[:, :off]], axis=1)

        def conv3x3(k, w_ref):
            # 3x3 conv at the UPSAMPLED resolution, expressed in plane space as 9
            # lane-shifted matmuls (plane weights precomputed in the wrapper).
            a_bf = bn_relu(k).astype(jnp.bfloat16)
            acc = None
            s = 0
            for si in (-1, 0, 1):
                for sj in (-1, 0, 1):
                    contrib = jnp.dot(w_ref[s], shift_lanes(a_bf, si * W + sj),
                                      preferred_element_type=jnp.float32)   # (4F, L)
                    if si != 0 and sj != 0:
                        contrib = contrib * (row_mask[si] * col_mask[sj])
                    elif si != 0:
                        contrib = contrib * row_mask[si]
                    elif sj != 0:
                        contrib = contrib * col_mask[sj]
                    acc = contrib if acc is None else acc + contrib
                    s += 1
            return acc + bias_ref[0:R_out, k:k + 1]

        def conv1x1(k, w_ref):
            a_bf = bn_relu(k).astype(jnp.bfloat16)
            return (jnp.dot(w_ref[...], a_bf, preferred_element_type=jnp.float32)
                    + bias_ref[0:R_out, k:k + 1])

        o3 = conv3x3(0, w1_ref)
        cat_ref[widths[0]:widths[1], :] = o3.astype(jnp.bfloat16)
        o7 = conv3x3(1, w2_ref)
        cat_ref[widths[1]:widths[2], :] = o7.astype(jnp.bfloat16)
        o11 = conv1x1(2, w3_ref)
        cat_ref[widths[2]:widths[3], :] = o11.astype(jnp.bfloat16)
        o15 = conv1x1(3, w4_ref)
        cat_ref[widths[3]:widths[4], :] = o15.astype(jnp.bfloat16)
        out = conv1x1(4, w5_ref)
        if C == F:                         # DecoderBlock_nocat residual: + unpool (f32)
            out = out + u
        o_ref[...] = out                   # lane-dense (4F, B*H*W) f32 store

    return kernel


def _pick_batch_block(N, HW, max_lanes=4096):
    # largest divisor B of N with B*HW lanes <= max_lanes and a 128-aligned lane block
    for b in range(N, 0, -1):
        if N % b == 0 and b * HW <= max_lanes and (b * HW) % 128 == 0:
            return b
    return N  # fall back to whole batch (block == full array is always legal)


def decoder_block_nocat(x_nhwc, p):
    """x_nhwc: (N, H, W, in_dim) -> (N, 2H, 2W, num_filters)."""
    N, H, W, Cin = x_nhwc.shape
    C, F = p['C'], p['F']
    Hu, Wu, HW = 2 * H, 2 * W, H * W
    R_in, R_out = 4 * C, 4 * F
    R_cat = 4 * (C + 4 * F)
    B = _pick_batch_block(N, HW)
    G = N // B
    Lb = B * HW

    # channels-first, pixels-on-lanes input layout (wrapper-side layout plumbing)
    x_cl = jnp.transpose(x_nhwc, (3, 0, 1, 2)).reshape(Cin, N * HW).astype(jnp.bfloat16)

    # VMEM budget: double-buffered I/O blocks + cat scratch + generous intermediates,
    # capped at 48 MiB so v7x (64 MiB physical) keeps headroom.
    io_bytes = 2 * (Cin * Lb * 2 + R_out * Lb * 4)
    scratch_bytes = R_cat * Lb * 2
    interm_bytes = 6 * R_cat * Lb * 4
    vmem_limit = int(min(48 * 2**20,
                         max(16 * 2**20, 2 * (io_bytes + scratch_bytes + interm_bytes))))

    kernel = _make_kernel(H, W, B, C, F)

    out_pl = pl.pallas_call(
        kernel,
        out_shape=jax.ShapeDtypeStruct((R_out, N * HW), jnp.float32),
        grid=(G,),
        in_specs=[
            pl.BlockSpec((Cin, Lb), lambda n: (0, n)),                      # x
            pl.BlockSpec((R_in, Cin), lambda n: (0, 0)),                    # unpool W
            pl.BlockSpec((R_in, 1), lambda n: (0, 0)),                      # unpool bias
            pl.BlockSpec((9, R_out, 4 * C), lambda n: (0, 0, 0)),           # conv1 (plane)
            pl.BlockSpec((9, R_out, 4 * (C + F)), lambda n: (0, 0, 0)),     # conv2 (plane)
            pl.BlockSpec((R_out, 4 * (C + 2 * F)), lambda n: (0, 0)),       # conv3 1x1
            pl.BlockSpec((R_out, 4 * (C + 3 * F)), lambda n: (0, 0)),       # conv4 1x1
            pl.BlockSpec((R_out, 4 * (C + 4 * F)), lambda n: (0, 0)),       # conv5 1x1
            pl.BlockSpec((R_out, 5), lambda n: (0, 0)),                     # conv biases
            pl.BlockSpec((R_cat, 5), lambda n: (0, 0)),                     # bn scale
            pl.BlockSpec((R_cat, 5), lambda n: (0, 0)),                     # bn shift
        ],
        out_specs=pl.BlockSpec((R_out, Lb), lambda n: (0, n)),
        scratch_shapes=[pltpu.VMEM((R_cat, Lb), jnp.bfloat16)],             # cat (bf16)
        compiler_params=pltpu.CompilerParams(
            dimension_semantics=("parallel",),
            vmem_limit_bytes=vmem_limit),
    )(x_cl, p['w_up_pl'], p['bt_col'], p['w1_pl'], p['w2_pl'],
      p['w3_pl'], p['w4_pl'], p['w5_pl'], p['bias_pl'],
      p['bn_scale_pl'], p['bn_shift_pl'])

    # plane -> NHWC un-permutation of the tiny F-channel result (wrapper-side XLA)
    out = out_pl.reshape(F, 2, 2, N, H, W)
    out = jnp.transpose(out, (3, 4, 1, 5, 2, 0)).reshape(N, Hu, Wu, F)
    return out


# ----------------------------------------------------------------------------
# Deterministic parameter initialization (synthetic, no checkpoint)
# ----------------------------------------------------------------------------
def init_params(key, hp, in_dim, out_dim):
    C, F = hp['num_channels'], hp['num_filters']
    assert out_dim == C, "unpool output feeds batchnorm1(num_channels)"
    Cmax = C + 4 * F
    ks = jax.random.split(key, 40)
    ki = iter(range(40))

    def nrm(shape, scale):
        return jax.random.normal(ks[next(ki)], shape, jnp.float32) * scale

    # ConvTranspose2d weight in torch layout (cin, cout, 2, 2)
    wt = nrm((in_dim, out_dim, 2, 2), 0.5 / (in_dim * 4) ** 0.5)
    bt = nrm((out_dim,), 0.1)

    def conv_w(co, ci, kh, kw):  # torch layout (co, ci, kh, kw)
        return nrm((co, ci, kh, kw), 0.5 / (ci * kh * kw) ** 0.5)

    cw1 = conv_w(F, C, 3, 3)
    cw2 = conv_w(F, C + F, 3, 3)
    cw3 = conv_w(F, C + 2 * F, 1, 1)
    cw4 = conv_w(F, C + 3 * F, 1, 1)
    cw5 = conv_w(F, C + 4 * F, 1, 1)
    biases = jnp.stack([nrm((F,), 0.1) for _ in range(5)])  # (5, F)

    # BatchNorm (inference mode) -> folded scale / shift per layer
    bn_chs = [C, C + F, C + 2 * F, C + 3 * F, C + 4 * F]
    scales, shifts = [], []
    for ch in bn_chs:
        gamma = 1.0 + nrm((ch,), 0.1)
        beta = nrm((ch,), 0.1)
        mean = nrm((ch,), 0.1)
        var = 0.5 + jax.random.uniform(ks[next(ki)], (ch,), jnp.float32)
        sc = gamma * lax.rsqrt(var + 1e-5)
        scales.append(sc)
        shifts.append(beta - mean * sc)

    # reference layouts (f32)
    w1 = jnp.transpose(cw1, (2, 3, 1, 0))      # HWIO (3,3,C,F)
    w2 = jnp.transpose(cw2, (2, 3, 1, 0))      # HWIO (3,3,C+F,F)
    w3 = cw3[:, :, 0, 0].T
    w4 = cw4[:, :, 0, 0].T
    w5 = cw5[:, :, 0, 0].T

    # ---- kernel (plane-decomposed) layouts --------------------------------------------
    # row/col ordering everywhere: global_channel * 4 + (a*2 + b), a/b = output row/col parity
    wt_np, bt_np = np.asarray(wt), np.asarray(bt)
    w_up_pl = np.transpose(wt_np, (1, 2, 3, 0)).reshape(4 * out_dim, in_dim)
    bt_col = np.repeat(bt_np, 4).reshape(4 * out_dim, 1)

    def plane3x3(w):
        # w: torch (Fo, ch, 3, 3).  Plane-space weights for the 9 lane shifts (si, sj):
        #   dy = 2*si + a' - a + 1, dx = 2*sj + b' - b + 1  (valid taps only)
        wn = np.asarray(w)
        Fo, ch = wn.shape[0], wn.shape[1]
        Ws = np.zeros((9, 4 * Fo, 4 * ch), np.float32)
        s = 0
        for si in (-1, 0, 1):
            for sj in (-1, 0, 1):
                for a in (0, 1):
                    for b in (0, 1):
                        for ap in (0, 1):
                            for bp in (0, 1):
                                dy = 2 * si + ap - a + 1
                                dx = 2 * sj + bp - b + 1
                                if 0 <= dy <= 2 and 0 <= dx <= 2:
                                    Ws[s, a * 2 + b::4, ap * 2 + bp::4] = wn[:, :, dy, dx]
                s += 1
        return Ws

    def plane1x1(w):
        wn = np.asarray(w)[:, :, 0, 0]                      # (Fo, ch)
        return np.kron(wn, np.eye(4, dtype=np.float32))     # (4Fo, 4ch)

    biases_np = np.asarray(biases)
    bias_pl = np.stack([np.repeat(biases_np[k], 4) for k in range(5)], axis=1)  # (4F, 5)
    bn_scale_pl = np.zeros((4 * Cmax, 5), np.float32)
    bn_shift_pl = np.zeros((4 * Cmax, 5), np.float32)
    for k, (sc, sh) in enumerate(zip(scales, shifts)):
        n = 4 * sc.shape[0]
        bn_scale_pl[0:n, k] = np.repeat(np.asarray(sc), 4)
        bn_shift_pl[0:n, k] = np.repeat(np.asarray(sh), 4)

    return dict(
        # reference-layout params (f32)
        wt=wt, bt=bt, w1=w1, w2=w2, w3=w3, w4=w4, w5=w5,
        bias=biases, bn_scale_list=scales, bn_shift_list=shifts,
        # kernel-layout params (plane-decomposed; bf16 matmul operands)
        w_up_pl=jnp.asarray(w_up_pl, jnp.bfloat16),
        bt_col=jnp.asarray(bt_col, jnp.float32),
        w1_pl=jnp.asarray(plane3x3(cw1), jnp.bfloat16),
        w2_pl=jnp.asarray(plane3x3(cw2), jnp.bfloat16),
        w3_pl=jnp.asarray(plane1x1(cw3), jnp.bfloat16),
        w4_pl=jnp.asarray(plane1x1(cw4), jnp.bfloat16),
        w5_pl=jnp.asarray(plane1x1(cw5), jnp.bfloat16),
        bias_pl=jnp.asarray(bias_pl, jnp.float32),
        bn_scale_pl=jnp.asarray(bn_scale_pl, jnp.float32),
        bn_shift_pl=jnp.asarray(bn_shift_pl, jnp.float32),
        C=C, F=F,
    )


# ----------------------------------------------------------------------------
# Pure-JAX reference (sanity check of the fused Pallas kernel)
# ----------------------------------------------------------------------------
def reference_forward(x, p):
    wt, bt = p['wt'], p['bt']
    N, H, W, _ = x.shape
    Cout = wt.shape[1]
    y = jnp.einsum('nhwc,coij->nhwijo', x, wt) + bt
    u = jnp.transpose(y, (0, 1, 3, 2, 4, 5)).reshape(N, 2 * H, 2 * W, Cout)

    def bn_relu(t, k):
        return jnp.maximum(t * p['bn_scale_list'][k] + p['bn_shift_list'][k], 0.0)

    def conv3x3(t, w, k):
        return lax.conv_general_dilated(
            t, w, (1, 1), ((1, 1), (1, 1)),
            dimension_numbers=('NHWC', 'HWIO', 'NHWC')) + p['bias'][k]

    def conv1x1(t, w, k):
        return jnp.einsum('nhwc,cf->nhwf', t, w) + p['bias'][k]

    o3 = conv3x3(bn_relu(u, 0), p['w1'], 0)
    o7 = conv3x3(bn_relu(jnp.concatenate([u, o3], -1), 1), p['w2'], 1)
    o11 = conv1x1(bn_relu(jnp.concatenate([u, o3, o7], -1), 2), p['w3'], 2)
    o15 = conv1x1(bn_relu(jnp.concatenate([u, o3, o7, o11], -1), 3), p['w4'], 3)
    out = conv1x1(bn_relu(jnp.concatenate([u, o3, o7, o11, o15], -1), 4), p['w5'], 4)
    if out.shape[-1] == u.shape[-1]:
        out = out + u
    return out


if __name__ == "__main__":
    hp = {'num_channels': 4, 'num_filters': 4, 'kernel_h': 3, 'kernel_w': 3,
          'stride_conv': 1, 'drop_out': 0}
    N, in_dim, H, W = 2, 8, 8, 8
    out_dim = hp['num_channels']

    p = init_params(jax.random.PRNGKey(0), hp, in_dim, out_dim)
    x_nchw = jax.random.normal(jax.random.PRNGKey(1), (N, in_dim, H, W), jnp.float32)
    x = jnp.transpose(x_nchw, (0, 2, 3, 1))  # NCHW -> NHWC

    out = decoder_block_nocat(x, p)
    out = jax.block_until_ready(out)

    assert out.shape == (N, 2 * H, 2 * W, hp['num_filters'])
    ref = reference_forward(x, p)
    np.testing.assert_allclose(np.asarray(out), np.asarray(ref), atol=2e-2, rtol=2e-2)
    print("KERNEL_OK")
</pallas_src>

<mosaic_0001>
module attributes {stable_mosaic.version = 11 : i64} {
  func.func @kernel(%arg0: i32, %arg1: memref<8x128xbf16, #tpu.memory_space<vmem>>, %arg2: memref<16x8xbf16, #tpu.memory_space<vmem>>, %arg3: memref<16x1xf32, #tpu.memory_space<vmem>>, %arg4: memref<9x16x16xbf16, #tpu.memory_space<vmem>>, %arg5: memref<9x16x32xbf16, #tpu.memory_space<vmem>>, %arg6: memref<16x48xbf16, #tpu.memory_space<vmem>>, %arg7: memref<16x64xbf16, #tpu.memory_space<vmem>>, %arg8: memref<16x80xbf16, #tpu.memory_space<vmem>>, %arg9: memref<16x5xf32, #tpu.memory_space<vmem>>, %arg10: memref<80x5xf32, #tpu.memory_space<vmem>>, %arg11: memref<80x5xf32, #tpu.memory_space<vmem>>, %arg12: memref<16x128xf32, #tpu.memory_space<vmem>>, %arg13: memref<80x128xbf16, #tpu.memory_space<vmem>>) attributes {dimension_semantics = [#tpu.dimension_semantics<parallel>], iteration_bounds = array<i64: 1>, scalar_prefetch = 0 : i64, scratch_operands = 1 : i64, tpu.core_type = #tpu.core_type<tc>, window_params = [{transform_indices = @transform_0, window_bounds = array<i64: 8, 128>}, {pipeline_mode = #tpu.pipeline_mode<synchronous>, transform_indices = @transform_1, window_bounds = array<i64: 16, 8>}, {pipeline_mode = #tpu.pipeline_mode<synchronous>, transform_indices = @transform_2, window_bounds = array<i64: 16, 1>}, {pipeline_mode = #tpu.pipeline_mode<synchronous>, transform_indices = @transform_3, window_bounds = array<i64: 9, 16, 16>}, {pipeline_mode = #tpu.pipeline_mode<synchronous>, transform_indices = @transform_4, window_bounds = array<i64: 9, 16, 32>}, {pipeline_mode = #tpu.pipeline_mode<synchronous>, transform_indices = @transform_5, window_bounds = array<i64: 16, 48>}, {pipeline_mode = #tpu.pipeline_mode<synchronous>, transform_indices = @transform_6, window_bounds = array<i64: 16, 64>}, {pipeline_mode = #tpu.pipeline_mode<synchronous>, transform_indices = @transform_7, window_bounds = array<i64: 16, 80>}, {pipeline_mode = #tpu.pipeline_mode<synchronous>, transform_indices = @transform_8, window_bounds = array<i64: 16, 5>}, {pipeline_mode = #tpu.pipeline_mode<synchronous>, transform_indices = @transform_9, window_bounds = array<i64: 80, 5>}, {pipeline_mode = #tpu.pipeline_mode<synchronous>, transform_indices = @transform_10, window_bounds = array<i64: 80, 5>}, {transform_indices = @transform_11, window_bounds = array<i64: 16, 128>}]} {
    %0 = tpu.iota {dimensions = array<i32: 1>} : vector<1x128xi32>
    %1 = arith.sitofp %0 : vector<1x128xi32> to vector<1x128xf32>
    %cst = arith.constant 5.000000e-01 : f32
    %2 = vector.broadcast %cst : f32 to vector<1x128xf32>
    %3 = arith.addf %1, %2 : vector<1x128xf32>
    %cst_0 = arith.constant 1.250000e-01 : f32
    %4 = vector.broadcast %cst_0 : f32 to vector<1x128xf32>
    %5 = arith.mulf %3, %4 : vector<1x128xf32>
    %6 = math.floor %5 : vector<1x128xf32>
    %cst_1 = arith.constant 8.000000e+00 : f32
    %7 = vector.broadcast %cst_1 : f32 to vector<1x128xf32>
    %8 = arith.mulf %6, %7 : vector<1x128xf32>
    %9 = arith.subf %1, %8 : vector<1x128xf32>
    %cst_2 = arith.constant 5.000000e-01 : f32
    %10 = vector.broadcast %cst_2 : f32 to vector<1x128xf32>
    %11 = arith.addf %6, %10 : vector<1x128xf32>
    %cst_3 = arith.constant 1.250000e-01 : f32
    %12 = vector.broadcast %cst_3 : f32 to vector<1x128xf32>
    %13 = arith.mulf %11, %12 : vector<1x128xf32>
    %14 = math.floor %13 : vector<1x128xf32>
    %cst_4 = arith.constant 8.000000e+00 : f32
    %15 = vector.broadcast %cst_4 : f32 to vector<1x128xf32>
    %16 = arith.mulf %14, %15 : vector<1x128xf32>
    %17 = arith.subf %6, %16 : vector<1x128xf32>
    %cst_5 = arith.constant 5.000000e-01 : f32
    %18 = vector.broadcast %cst_5 : f32 to vector<1x128xf32>
    %19 = arith.cmpf oge, %17, %18 : vector<1x128xf32>
    %cst_6 = arith.constant 1.000000e+00 : f32
    %cst_7 = arith.constant 0.000000e+00 : f32
    %20 = vector.broadcast %cst_6 : f32 to vector<1x128xf32>
    %21 = vector.broadcast %cst_7 : f32 to vector<1x128xf32>
    %22 = arith.select %19, %20, %21 : vector<1x128xi1>, vector<1x128xf32>
    %cst_8 = arith.constant 6.500000e+00 : f32
    %23 = vector.broadcast %cst_8 : f32 to vector<1x128xf32>
    %24 = arith.cmpf ole, %17, %23 : vector<1x128xf32>
    %cst_9 = arith.constant 1.000000e+00 : f32
    %cst_10 = arith.constant 0.000000e+00 : f32
    %25 = vector.broadcast %cst_9 : f32 to vector<1x128xf32>
    %26 = vector.broadcast %cst_10 : f32 to vector<1x128xf32>
    %27 = arith.select %24, %25, %26 : vector<1x128xi1>, vector<1x128xf32>
    %cst_11 = arith.constant 5.000000e-01 : f32
    %28 = vector.broadcast %cst_11 : f32 to vector<1x128xf32>
    %29 = arith.cmpf oge, %9, %28 : vector<1x128xf32>
    %cst_12 = arith.constant 1.000000e+00 : f32
    %cst_13 = arith.constant 0.000000e+00 : f32
    %30 = vector.broadcast %cst_12 : f32 to vector<1x128xf32>
    %31 = vector.broadcast %cst_13 : f32 to vector<1x128xf32>
    %32 = arith.select %29, %30, %31 : vector<1x128xi1>, vector<1x128xf32>
    %cst_14 = arith.constant 6.500000e+00 : f32
    %33 = vector.broadcast %cst_14 : f32 to vector<1x128xf32>
    %34 = arith.cmpf ole, %9, %33 : vector<1x128xf32>
    %cst_15 = arith.constant 1.000000e+00 : f32
    %cst_16 = arith.constant 0.000000e+00 : f32
    %35 = vector.broadcast %cst_15 : f32 to vector<1x128xf32>
    %36 = vector.broadcast %cst_16 : f32 to vector<1x128xf32>
    %37 = arith.select %34, %35, %36 : vector<1x128xi1>, vector<1x128xf32>
    %c0 = arith.constant 0 : index
    %c0_17 = arith.constant 0 : index
    %38 = vector.load %arg2[%c0, %c0_17] : memref<16x8xbf16, #tpu.memory_space<vmem>>, vector<16x8xbf16>
    %c0_18 = arith.constant 0 : index
    %c0_19 = arith.constant 0 : index
    %39 = vector.load %arg1[%c0_18, %c0_19] : memref<8x128xbf16, #tpu.memory_space<vmem>>, vector<8x128xbf16>
    %cst_20 = arith.constant dense<0.000000e+00> : vector<16x128xf32>
    %40 = tpu.matmul %38, %39, %cst_20 {dimension_numbers = #tpu.dot_dimension_numbers<[1], [0], [0], [1], [0, 0, 1, 1], [], []>} : vector<16x8xbf16>, vector<8x128xbf16>, vector<16x128xf32> -> vector<16x128xf32>
    %c0_21 = arith.constant 0 : index
    %c0_22 = arith.constant 0 : index
    %41 = vector.load %arg3[%c0_21, %c0_22] : memref<16x1xf32, #tpu.memory_space<vmem>>, vector<16x1xf32>
    %42 = vector.broadcast %41 : vector<16x1xf32> to vector<16x128xf32>
    %43 = arith.addf %40, %42 : vector<16x128xf32>
    %44 = arith.truncf %43 : vector<16x128xf32> to vector<16x128xbf16>
    %c0_23 = arith.constant 0 : index
    %c0_24 = arith.constant 0 : index
    %45 = vector.load %arg13[%c0_23, %c0_24] : memref<80x128xbf16, #tpu.memory_space<vmem>>, vector<16x128xbf16>
    tpu.vector_store %arg13[%c0_23, %c0_24], %44 {strides = array<i32>} : memref<80x128xbf16, #tpu.memory_space<vmem>>, vector<16x128xbf16>,
    %c0_25 = arith.constant 0 : index
    %c0_26 = arith.constant 0 : index
    %46 = vector.load %arg13[%c0_25, %c0_26] : memref<80x128xbf16, #tpu.memory_space<vmem>>, vector<16x128xbf16>
    %47 = arith.extf %46 : vector<16x128xbf16> to vector<16x128xf32>
    %c0_27 = arith.constant 0 : index
    %c0_28 = arith.constant 0 : index
    %48 = vector.load %arg10[%c0_27, %c0_28] : memref<80x5xf32, #tpu.memory_space<vmem>>, vector<16x1xf32>
    %49 = vector.broadcast %48 : vector<16x1xf32> to vector<16x128xf32>
    %50 = arith.mulf %47, %49 : vector<16x128xf32>
    %c0_29 = arith.constant 0 : index
    %c0_30 = arith.constant 0 : index
    %51 = vector.load %arg11[%c0_29, %c0_30] : memref<80x5xf32, #tpu.memory_space<vmem>>, vector<16x1xf32>
    %52 = vector.broadcast %51 : vector<16x1xf32> to vector<16x128xf32>
    %53 = arith.addf %50, %52 : vector<16x128xf32>
    %cst_31 = arith.constant 0.000000e+00 : f32
    %54 = vector.broadcast %cst_31 : f32 to vector<16x128xf32>
    %55 = arith.maximumf %53, %54 : vector<16x128xf32>
    %56 = arith.truncf %55 : vector<16x128xf32> to vector<16x128xbf16>
    %c0_32 = arith.constant 0 : index
    %c0_33 = arith.constant 0 : index
    %c0_34 = arith.constant 0 : index
    %57 = vector.load %arg4[%c0_32, %c0_33, %c0_34] : memref<9x16x16xbf16, #tpu.memory_space<vmem>>, vector<1x16x16xbf16>
    %58 = vector.shape_cast %57 : vector<1x16x16xbf16> to vector<16x16xbf16>
    %59 = vector.extract_strided_slice %56 {offsets = [0, 119], sizes = [16, 9], strides = [1, 1]} : vector<16x128xbf16> to vector<16x9xbf16>
    %60 = vector.extract_strided_slice %56 {offsets = [0, 0], sizes = [16, 119], strides = [1, 1]} : vector<16x128xbf16> to vector<16x119xbf16>
    %61 = tpu.concatenate %59, %60 in 1 : vector<16x9xbf16>, vector<16x119xbf16> -> vector<16x128xbf16>
    %cst_35 = arith.constant dense<0.000000e+00> : vector<16x128xf32>
    %62 = tpu.matmul %58, %61, %cst_35 {dimension_numbers = #tpu.dot_dimension_numbers<[1], [0], [0], [1], [0, 0, 1, 1], [], []>} : vector<16x16xbf16>, vector<16x128xbf16>, vector<16x128xf32> -> vector<16x128xf32>
    %63 = arith.mulf %22, %32 : vector<1x128xf32>
    %64 = vector.broadcast %63 : vector<1x128xf32> to vector<16x128xf32>
    %65 = arith.mulf %62, %64 : vector<16x128xf32>
    %c1 = arith.constant 1 : index
    %c0_36 = arith.constant 0 : index
    %c0_37 = arith.constant 0 : index
    %66 = vector.load %arg4[%c1, %c0_36, %c0_37] : memref<9x16x16xbf16, #tpu.memory_space<vmem>>, vector<1x16x16xbf16>
    %67 = vector.shape_cast %66 : vector<1x16x16xbf16> to vector<16x16xbf16>
    %68 = vector.extract_strided_slice %56 {offsets = [0, 120], sizes = [16, 8], strides = [1, 1]} : vector<16x128xbf16> to vector<16x8xbf16>
    %69 = vector.extract_strided_slice %56 {offsets = [0, 0], sizes = [16, 120], strides = [1, 1]} : vector<16x128xbf16> to vector<16x120xbf16>
    %70 = tpu.concatenate %68, %69 in 1 : vector<16x8xbf16>, vector<16x120xbf16> -> vector<16x128xbf16>
    %cst_38 = arith.constant dense<0.000000e+00> : vector<16x128xf32>
    %71 = tpu.matmul %67, %70, %cst_38 {dimension_numbers = #tpu.dot_dimension_numbers<[1], [0], [0], [1], [0, 0, 1, 1], [], []>} : vector<16x16xbf16>, vector<16x128xbf16>, vector<16x128xf32> -> vector<16x128xf32>
    %72 = vector.broadcast %22 : vector<1x128xf32> to vector<16x128xf32>
    %73 = arith.mulf %71, %72 : vector<16x128xf32>
    %74 = arith.addf %65, %73 : vector<16x128xf32>
    %c2 = arith.constant 2 : index
    %c0_39 = arith.constant 0 : index
    %c0_40 = arith.constant 0 : index
    %75 = vector.load %arg4[%c2, %c0_39, %c0_40] : memref<9x16x16xbf16, #tpu.memory_space<vmem>>, vector<1x16x16xbf16>
    %76 = vector.shape_cast %75 : vector<1x16x16xbf16> to vector<16x16xbf16>
    %77 = vector.extract_strided_slice %56 {offsets = [0, 121], sizes = [16, 7], strides = [1, 1]} : vector<16x128xbf16> to vector<16x7xbf16>
    %78 = vector.extract_strided_slice %56 {offsets = [0, 0], sizes = [16, 121], strides = [1, 1]} : vector<16x128xbf16> to vector<16x121xbf16>
    %79 = tpu.concatenate %77, %78 in 1 : vector<16x7xbf16>, vector<16x121xbf16> -> vector<16x128xbf16>
    %cst_41 = arith.constant dense<0.000000e+00> : vector<16x128xf32>
    %80 = tpu.matmul %76, %79, %cst_41 {dimension_numbers = #tpu.dot_dimension_numbers<[1], [0], [0], [1], [0, 0, 1, 1], [], []>} : vector<16x16xbf16>, vector<16x128xbf16>, vector<16x128xf32> -> vector<16x128xf32>
    %81 = arith.mulf %22, %37 : vector<1x128xf32>
    %82 = vector.broadcast %81 : vector<1x128xf32> to vector<16x128xf32>
    %83 = arith.mulf %80, %82 : vector<16x128xf32>
    %84 = arith.addf %74, %83 : vector<16x128xf32>
    %c3 = arith.constant 3 : index
    %c0_42 = arith.constant 0 : index
    %c0_43 = arith.constant 0 : index
    %85 = vector.load %arg4[%c3, %c0_42, %c0_43] : memref<9x16x16xbf16, #tpu.memory_space<vmem>>, vector<1x16x16xbf16>
    %86 = vector.shape_cast %85 : vector<1x16x16xbf16> to vector<16x16xbf16>
    %87 = vector.extract_strided_slice %56 {offsets = [0, 127], sizes = [16, 1], strides = [1, 1]} : vector<16x128xbf16> to vector<16x1xbf16>
    %88 = vector.extract_strided_slice %56 {offsets = [0, 0], sizes = [16, 127], strides = [1, 1]} : vector<16x128xbf16> to vector<16x127xbf16>
    %89 = tpu.concatenate %87, %88 in 1 : vector<16x1xbf16>, vector<16x127xbf16> -> vector<16x128xbf16>
    %cst_44 = arith.constant dense<0.000000e+00> : vector<16x128xf32>
    %90 = tpu.matmul %86, %89, %cst_44 {dimension_numbers = #tpu.dot_dimension_numbers<[1], [0], [0], [1], [0, 0, 1, 1], [], []>} : vector<16x16xbf16>, vector<16x128xbf16>, vector<16x128xf32> -> vector<16x128xf32>
    %91 = vector.broadcast %32 : vector<1x128xf32> to vector<16x128xf32>
    %92 = arith.mulf %90, %91 : vector<16x128xf32>
    %93 = arith.addf %84, %92 : vector<16x128xf32>
    %c4 = arith.constant 4 : index
    %c0_45 = arith.constant 0 : index
    %c0_46 = arith.constant 0 : index
    %94 = vector.load %arg4[%c4, %c0_45, %c0_46] : memref<9x16x16xbf16, #tpu.memory_space<vmem>>, vector<1x16x16xbf16>
    %95 = vector.shape_cast %94 : vector<1x16x16xbf16> to vector<16x16xbf16>
    %cst_47 = arith.constant dense<0.000000e+00> : vector<16x128xf32>
    %96 = tpu.matmul %95, %56, %cst_47 {dimension_numbers = #tpu.dot_dimension_numbers<[1], [0], [0], [1], [0, 0, 1, 1], [], []>} : vector<16x16xbf16>, vector<16x128xbf16>, vector<16x128xf32> -> vector<16x128xf32>
    %97 = arith.addf %93, %96 : vector<16x128xf32>
    %c5 = arith.constant 5 : index
    %c0_48 = arith.constant 0 : index
    %c0_49 = arith.constant 0 : index
    %98 = vector.load %arg4[%c5, %c0_48, %c0_49] : memref<9x16x16xbf16, #tpu.memory_space<vmem>>, vector<1x16x16xbf16>
    %99 = vector.shape_cast %98 : vector<1x16x16xbf16> to vector<16x16xbf16>
    %100 = vector.extract_strided_slice %56 {offsets = [0, 1], sizes = [16, 127], strides = [1, 1]} : vector<16x128xbf16> to vector<16x127xbf16>
    %101 = vector.extract_strided_slice %56 {offsets = [0, 0], sizes = [16, 1], strides = [1, 1]} : vector<16x128xbf16> to vector<16x1xbf16>
    %102 = tpu.concatenate %100, %101 in 1 : vector<16x127xbf16>, vector<16x1xbf16> -> vector<16x128xbf16>
    %cst_50 = arith.constant dense<0.000000e+00> : vector<16x128xf32>
    %103 = tpu.matmul %99, %102, %cst_50 {dimension_numbers = #tpu.dot_dimension_numbers<[1], [0], [0], [1], [0, 0, 1, 1], [], []>} : vector<16x16xbf16>, vector<16x128xbf16>, vector<16x128xf32> -> vector<16x128xf32>
    %104 = vector.broadcast %37 : vector<1x128xf32> to vector<16x128xf32>
    %105 = arith.mulf %103, %104 : vector<16x128xf32>
    %106 = arith.addf %97, %105 : vector<16x128xf32>
    %c6 = arith.constant 6 : index
    %c0_51 = arith.constant 0 : index
    %c0_52 = arith.constant 0 : index
    %107 = vector.load %arg4[%c6, %c0_51, %c0_52] : memref<9x16x16xbf16, #tpu.memory_space<vmem>>, vector<1x16x16xbf16>
    %108 = vector.shape_cast %107 : vector<1x16x16xbf16> to vector<16x16xbf16>
    %109 = vector.extract_strided_slice %56 {offsets = [0, 7], sizes = [16, 121], strides = [1, 1]} : vector<16x128xbf16> to vector<16x121xbf16>
    %110 = vector.extract_strided_slice %56 {offsets = [0, 0], sizes = [16, 7], strides = [1, 1]} : vector<16x128xbf16> to vector<16x7xbf16>
    %111 = tpu.concatenate %109, %110 in 1 : vector<16x121xbf16>, vector<16x7xbf16> -> vector<16x128xbf16>
    %cst_53 = arith.constant dense<0.000000e+00> : vector<16x128xf32>
    %112 = tpu.matmul %108, %111, %cst_53 {dimension_numbers = #tpu.dot_dimension_numbers<[1], [0], [0], [1], [0, 0, 1, 1], [], []>} : vector<16x16xbf16>, vector<16x128xbf16>, vector<16x128xf32> -> vector<16x128xf32>
    %113 = arith.mulf %27, %32 : vector<1x128xf32>
    %114 = vector.broadcast %113 : vector<1x128xf32> to vector<16x128xf32>
    %115 = arith.mulf %112, %114 : vector<16x128xf32>
    %116 = arith.addf %106, %115 : vector<16x128xf32>
    %c7 = arith.constant 7 : index
    %c0_54 = arith.constant 0 : index
    %c0_55 = arith.constant 0 : index
    %117 = vector.load %arg4[%c7, %c0_54, %c0_55] : memref<9x16x16xbf16, #tpu.memory_space<vmem>>, vector<1x16x16xbf16>
    %118 = vector.shape_cast %117 : vector<1x16x16xbf16> to vector<16x16xbf16>
    %119 = vector.extract_strided_slice %56 {offsets = [0, 8], sizes = [16, 120], strides = [1, 1]} : vector<16x128xbf16> to vector<16x120xbf16>
    %120 = vector.extract_strided_slice %56 {offsets = [0, 0], sizes = [16, 8], strides = [1, 1]} : vector<16x128xbf16> to vector<16x8xbf16>
    %121 = tpu.concatenate %119, %120 in 1 : vector<16x120xbf16>, vector<16x8xbf16> -> vector<16x128xbf16>
    %cst_56 = arith.constant dense<0.000000e+00> : vector<16x128xf32>
    %122 = tpu.matmul %118, %121, %cst_56 {dimension_numbers = #tpu.dot_dimension_numbers<[1], [0], [0], [1], [0, 0, 1, 1], [], []>} : vector<16x16xbf16>, vector<16x128xbf16>, vector<16x128xf32> -> vector<16x128xf32>
    %123 = vector.broadcast %27 : vector<1x128xf32> to vector<16x128xf32>
    %124 = arith.mulf %122, %123 : vector<16x128xf32>
    %125 = arith.addf %116, %124 : vector<16x128xf32>
    %c8 = arith.constant 8 : index
    %c0_57 = arith.constant 0 : index
    %c0_58 = arith.constant 0 : index
    %126 = vector.load %arg4[%c8, %c0_57, %c0_58] : memref<9x16x16xbf16, #tpu.memory_space<vmem>>, vector<1x16x16xbf16>
    %127 = vector.shape_cast %126 : vector<1x16x16xbf16> to vector<16x16xbf16>
    %128 = vector.extract_strided_slice %56 {offsets = [0, 9], sizes = [16, 119], strides = [1, 1]} : vector<16x128xbf16> to vector<16x119xbf16>
    %129 = vector.extract_strided_slice %56 {offsets = [0, 0], sizes = [16, 9], strides = [1, 1]} : vector<16x128xbf16> to vector<16x9xbf16>
    %130 = tpu.concatenate %128, %129 in 1 : vector<16x119xbf16>, vector<16x9xbf16> -> vector<16x128xbf16>
    %cst_59 = arith.constant dense<0.000000e+00> : vector<16x128xf32>
    %131 = tpu.matmul %127, %130, %cst_59 {dimension_numbers = #tpu.dot_dimension_numbers<[1], [0], [0], [1], [0, 0, 1, 1], [], []>} : vector<16x16xbf16>, vector<16x128xbf16>, vector<16x128xf32> -> vector<16x128xf32>
    %132 = arith.mulf %27, %37 : vector<1x128xf32>
    %133 = vector.broadcast %132 : vector<1x128xf32> to vector<16x128xf32>
    %134 = arith.mulf %131, %133 : vector<16x128xf32>
    %135 = arith.addf %125, %134 : vector<16x128xf32>
    %c0_60 = arith.constant 0 : index
    %c0_61 = arith.constant 0 : index
    %136 = vector.load %arg9[%c0_60, %c0_61] : memref<16x5xf32, #tpu.memory_space<vmem>>, vector<16x1xf32>
    %137 = vector.broadcast %136 : vector<16x1xf32> to vector<16x128xf32>
    %138 = arith.addf %135, %137 : vector<16x128xf32>
    %139 = arith.truncf %138 : vector<16x128xf32> to vector<16x128xbf16>
    %c16 = arith.constant 16 : index
    %c0_62 = arith.constant 0 : index
    %140 = vector.load %arg13[%c16, %c0_62] : memref<80x128xbf16, #tpu.memory_space<vmem>>, vector<16x128xbf16>
    tpu.vector_store %arg13[%c16, %c0_62], %139 {strides = array<i32>} : memref<80x128xbf16, #tpu.memory_space<vmem>>, vector<16x128xbf16>,
    %c0_63 = arith.constant 0 : index
    %c0_64 = arith.constant 0 : index
    %141 = vector.load %arg13[%c0_63, %c0_64] : memref<80x128xbf16, #tpu.memory_space<vmem>>, vector<32x128xbf16>
    %142 = arith.extf %141 : vector<32x128xbf16> to vector<32x128xf32>
    %c0_65 = arith.constant 0 : index
    %c1_66 = arith.constant 1 : index
    %143 = vector.load %arg10[%c0_65, %c1_66] : memref<80x5xf32, #tpu.memory_space<vmem>>, vector<32x1xf32>
    %144 = vector.broadcast %143 : vector<32x1xf32> to vector<32x128xf32>
    %145 = arith.mulf %142, %144 : vector<32x128xf32>
    %c0_67 = arith.constant 0 : index
    %c1_68 = arith.constant 1 : index
    %146 = vector.load %arg11[%c0_67, %c1_68] : memref<80x5xf32, #tpu.memory_space<vmem>>, vector<32x1xf32>
    %147 = vector.broadcast %146 : vector<32x1xf32> to vector<32x128xf32>
    %148 = arith.addf %145, %147 : vector<32x128xf32>
    %cst_69 = arith.constant 0.000000e+00 : f32
    %149 = vector.broadcast %cst_69 : f32 to vector<32x128xf32>
    %150 = arith.maximumf %148, %149 : vector<32x128xf32>
    %151 = arith.truncf %150 : vector<32x128xf32> to vector<32x128xbf16>
    %c0_70 = arith.constant 0 : index
    %c0_71 = arith.constant 0 : index
    %c0_72 = arith.constant 0 : index
    %152 = vector.load %arg5[%c0_70, %c0_71, %c0_72] : memref<9x16x32xbf16, #tpu.memory_space<vmem>>, vector<1x16x32xbf16>
    %153 = vector.shape_cast %152 : vector<1x16x32xbf16> to vector<16x32xbf16>
    %154 = vector.extract_strided_slice %151 {offsets = [0, 119], sizes = [32, 9], strides = [1, 1]} : vector<32x128xbf16> to vector<32x9xbf16>
    %155 = vector.extract_strided_slice %151 {offsets = [0, 0], sizes = [32, 119], strides = [1, 1]} : vector<32x128xbf16> to vector<32x119xbf16>
    %156 = tpu.concatenate %154, %155 in 1 : vector<32x9xbf16>, vector<32x119xbf16> -> vector<32x128xbf16>
    %cst_73 = arith.constant dense<0.000000e+00> : vector<16x128xf32>
    %157 = tpu.matmul %153, %156, %cst_73 {dimension_numbers = #tpu.dot_dimension_numbers<[1], [0], [0], [1], [0, 0, 1, 1], [], []>} : vector<16x32xbf16>, vector<32x128xbf16>, vector<16x128xf32> -> vector<16x128xf32>
    %158 = arith.mulf %22, %32 : vector<1x128xf32>
    %159 = vector.broadcast %158 : vector<1x128xf32> to vector<16x128xf32>
    %160 = arith.mulf %157, %159 : vector<16x128xf32>
    %c1_74 = arith.constant 1 : index
    %c0_75 = arith.constant 0 : index
    %c0_76 = arith.constant 0 : index
    %161 = vector.load %arg5[%c1_74, %c0_75, %c0_76] : memref<9x16x32xbf16, #tpu.memory_space<vmem>>, vector<1x16x32xbf16>
    %162 = vector.shape_cast %161 : vector<1x16x32xbf16> to vector<16x32xbf16>
    %163 = vector.extract_strided_slice %151 {offsets = [0, 120], sizes = [32, 8], strides = [1, 1]} : vector<32x128xbf16> to vector<32x8xbf16>
    %164 = vector.extract_strided_slice %151 {offsets = [0, 0], sizes = [32, 120], strides = [1, 1]} : vector<32x128xbf16> to vector<32x120xbf16>
    %165 = tpu.concatenate %163, %164 in 1 : vector<32x8xbf16>, vector<32x120xbf16> -> vector<32x128xbf16>
    %cst_77 = arith.constant dense<0.000000e+00> : vector<16x128xf32>
    %166 = tpu.matmul %162, %165, %cst_77 {dimension_numbers = #tpu.dot_dimension_numbers<[1], [0], [0], [1], [0, 0, 1, 1], [], []>} : vector<16x32xbf16>, vector<32x128xbf16>, vector<16x128xf32> -> vector<16x128xf32>
    %167 = vector.broadcast %22 : vector<1x128xf32> to vector<16x128xf32>
    %168 = arith.mulf %166, %167 : vector<16x128xf32>
    %169 = arith.addf %160, %168 : vector<16x128xf32>
    %c2_78 = arith.constant 2 : index
    %c0_79 = arith.constant 0 : index
    %c0_80 = arith.constant 0 : index
    %170 = vector.load %arg5[%c2_78, %c0_79, %c0_80] : memref<9x16x32xbf16, #tpu.memory_space<vmem>>, vector<1x16x32xbf16>
    %171 = vector.shape_cast %170 : vector<1x16x32xbf16> to vector<16x32xbf16>
    %172 = vector.extract_strided_slice %151 {offsets = [0, 121], sizes = [32, 7], strides = [1, 1]} : vector<32x128xbf16> to vector<32x7xbf16>
    %173 = vector.extract_strided_slice %151 {offsets = [0, 0], sizes = [32, 121], strides = [1, 1]} : vector<32x128xbf16> to vector<32x121xbf16>
    %174 = tpu.concatenate %172, %173 in 1 : vector<32x7xbf16>, vector<32x121xbf16> -> vector<32x128xbf16>
    %cst_81 = arith.constant dense<0.000000e+00> : vector<16x128xf32>
    %175 = tpu.matmul %171, %174, %cst_81 {dimension_numbers = #tpu.dot_dimension_numbers<[1], [0], [0], [1], [0, 0, 1, 1], [], []>} : vector<16x32xbf16>, vector<32x128xbf16>, vector<16x128xf32> -> vector<16x128xf32>
    %176 = arith.mulf %22, %37 : vector<1x128xf32>
    %177 = vector.broadcast %176 : vector<1x128xf32> to vector<16x128xf32>
    %178 = arith.mulf %175, %177 : vector<16x128xf32>
    %179 = arith.addf %169, %178 : vector<16x128xf32>
    %c3_82 = arith.constant 3 : index
    %c0_83 = arith.constant 0 : index
    %c0_84 = arith.constant 0 : index
    %180 = vector.load %arg5[%c3_82, %c0_83, %c0_84] : memref<9x16x32xbf16, #tpu.memory_space<vmem>>, vector<1x16x32xbf16>
    %181 = vector.shape_cast %180 : vector<1x16x32xbf16> to vector<16x32xbf16>
    %182 = vector.extract_strided_slice %151 {offsets = [0, 127], sizes = [32, 1], strides = [1, 1]} : vector<32x128xbf16> to vector<32x1xbf16>
    %183 = vector.extract_strided_slice %151 {offsets = [0, 0], sizes = [32, 127], strides = [1, 1]} : vector<32x128xbf16> to vector<32x127xbf16>
    %184 = tpu.concatenate %182, %183 in 1 : vector<32x1xbf16>, vector<32x127xbf16> -> vector<32x128xbf16>
    %cst_85 = arith.constant dense<0.000000e+00> : vector<16x128xf32>
    %185 = tpu.matmul %181, %184, %cst_85 {dimension_numbers = #tpu.dot_dimension_numbers<[1], [0], [0], [1], [0, 0, 1, 1], [], []>} : vector<16x32xbf16>, vector<32x128xbf16>, vector<16x128xf32> -> vector<16x128xf32>
    %186 = vector.broadcast %32 : vector<1x128xf32> to vector<16x128xf32>
    %187 = arith.mulf %185, %186 : vector<16x128xf32>
    %188 = arith.addf %179, %187 : vector<16x128xf32>
    %c4_86 = arith.constant 4 : index
    %c0_87 = arith.constant 0 : index
    %c0_88 = arith.constant 0 : index
    %189 = vector.load %arg5[%c4_86, %c0_87, %c0_88] : memref<9x16x32xbf16, #tpu.memory_space<vmem>>, vector<1x16x32xbf16>
    %190 = vector.shape_cast %189 : vector<1x16x32xbf16> to vector<16x32xbf16>
    %cst_89 = arith.constant dense<0.000000e+00> : vector<16x128xf32>
    %191 = tpu.matmul %190, %151, %cst_89 {dimension_numbers = #tpu.dot_dimension_numbers<[1], [0], [0], [1], [0, 0, 1, 1], [], []>} : vector<16x32xbf16>, vector<32x128xbf16>, vector<16x128xf32> -> vector<16x128xf32>
    %192 = arith.addf %188, %191 : vector<16x128xf32>
    %c5_90 = arith.constant 5 : index
    %c0_91 = arith.constant 0 : index
    %c0_92 = arith.constant 0 : index
    %193 = vector.load %arg5[%c5_90, %c0_91, %c0_92] : memref<9x16x32xbf16, #tpu.memory_space<vmem>>, vector<1x16x32xbf16>
    %194 = vector.shape_cast %193 : vector<1x16x32xbf16> to vector<16x32xbf16>
    %195 = vector.extract_strided_slice %151 {offsets = [0, 1], sizes = [32, 127], strides = [1, 1]} : vector<32x128xbf16> to vector<32x127xbf16>
    %196 = vector.extract_strided_slice %151 {offsets = [0, 0], sizes = [32, 1], strides = [1, 1]} : vector<32x128xbf16> to vector<32x1xbf16>
    %197 = tpu.concatenate %195, %196 in 1 : vector<32x127xbf16>, vector<32x1xbf16> -> vector<32x128xbf16>
    %cst_93 = arith.constant dense<0.000000e+00> : vector<16x128xf32>
    %198 = tpu.matmul %194, %197, %cst_93 {dimension_numbers = #tpu.dot_dimension_numbers<[1], [0], [0], [1], [0, 0, 1, 1], [], []>} : vector<16x32xbf16>, vector<32x128xbf16>, vector<16x128xf32> -> vector<16x128xf32>
    %199 = vector.broadcast %37 : vector<1x128xf32> to vector<16x128xf32>
    %200 = arith.mulf %198, %199 : vector<16x128xf32>
    %201 = arith.addf %192, %200 : vector<16x128xf32>
    %c6_94 = arith.constant 6 : index
    %c0_95 = arith.constant 0 : index
    %c0_96 = arith.constant 0 : index
    %202 = vector.load %arg5[%c6_94, %c0_95, %c0_96] : memref<9x16x32xbf16, #tpu.memory_space<vmem>>, vector<1x16x32xbf16>
    %203 = vector.shape_cast %202 : vector<1x16x32xbf16> to vector<16x32xbf16>
    %204 = vector.extract_strided_slice %151 {offsets = [0, 7], sizes = [32, 121], strides = [1, 1]} : vector<32x128xbf16> to vector<32x121xbf16>
    %205 = vector.extract_strided_slice %151 {offsets = [0, 0], sizes = [32, 7], strides = [1, 1]} : vector<32x128xbf16> to vector<32x7xbf16>
    %206 = tpu.concatenate %204, %205 in 1 : vector<32x121xbf16>, vector<32x7xbf16> -> vector<32x128xbf16>
    %cst_97 = arith.constant dense<0.000000e+00> : vector<16x128xf32>
    %207 = tpu.matmul %203, %206, %cst_97 {dimension_numbers = #tpu.dot_dimension_numbers<[1], [0], [0], [1], [0, 0, 1, 1], [], []>} : vector<16x32xbf16>, vector<32x128xbf16>, vector<16x128xf32> -> vector<16x128xf32>
    %208 = arith.mulf %27, %32 : vector<1x128xf32>
    %209 = vector.broadcast %208 : vector<1x128xf32> to vector<16x128xf32>
    %210 = arith.mulf %207, %209 : vector<16x128xf32>
    %211 = arith.addf %201, %210 : vector<16x128xf32>
    %c7_98 = arith.constant 7 : index
    %c0_99 = arith.constant 0 : index
    %c0_100 = arith.constant 0 : index
    %212 = vector.load %arg5[%c7_98, %c0_99, %c0_100] : memref<9x16x32xbf16, #tpu.memory_space<vmem>>, vector<1x16x32xbf16>
    %213 = vector.shape_cast %212 : vector<1x16x32xbf16> to vector<16x32xbf16>
    %214 = vector.extract_strided_slice %151 {offsets = [0, 8], sizes = [32, 120], strides = [1, 1]} : vector<32x128xbf16> to vector<32x120xbf16>
    %215 = vector.extract_strided_slice %151 {offsets = [0, 0], sizes = [32, 8], strides = [1, 1]} : vector<32x128xbf16> to vector<32x8xbf16>
    %216 = tpu.concatenate %214, %215 in 1 : vector<32x120xbf16>, vector<32x8xbf16> -> vector<32x128xbf16>
    %cst_101 = arith.constant dense<0.000000e+00> : vector<16x128xf32>
    %217 = tpu.matmul %213, %216, %cst_101 {dimension_numbers = #tpu.dot_dimension_numbers<[1], [0], [0], [1], [0, 0, 1, 1], [], []>} : vector<16x32xbf16>, vector<32x128xbf16>, vector<16x128xf32> -> vector<16x128xf32>
    %218 = vector.broadcast %27 : vector<1x128xf32> to vector<16x128xf32>
    %219 = arith.mulf %217, %218 : vector<16x128xf32>
    %220 = arith.addf %211, %219 : vector<16x128xf32>
    %c8_102 = arith.constant 8 : index
    %c0_103 = arith.constant 0 : index
    %c0_104 = arith.constant 0 : index
    %221 = vector.load %arg5[%c8_102, %c0_103, %c0_104] : memref<9x16x32xbf16, #tpu.memory_space<vmem>>, vector<1x16x32xbf16>
    %222 = vector.shape_cast %221 : vector<1x16x32xbf16> to vector<16x32xbf16>
    %223 = vector.extract_strided_slice %151 {offsets = [0, 9], sizes = [32, 119], strides = [1, 1]} : vector<32x128xbf16> to vector<32x119xbf16>
    %224 = vector.extract_strided_slice %151 {offsets = [0, 0], sizes = [32, 9], strides = [1, 1]} : vector<32x128xbf16> to vector<32x9xbf16>
    %225 = tpu.concatenate %223, %224 in 1 : vector<32x119xbf16>, vector<32x9xbf16> -> vector<32x128xbf16>
    %cst_105 = arith.constant dense<0.000000e+00> : vector<16x128xf32>
    %226 = tpu.matmul %222, %225, %cst_105 {dimension_numbers = #tpu.dot_dimension_numbers<[1], [0], [0], [1], [0, 0, 1, 1], [], []>} : vector<16x32xbf16>, vector<32x128xbf16>, vector<16x128xf32> -> vector<16x128xf32>
    %227 = arith.mulf %27, %37 : vector<1x128xf32>
    %228 = vector.broadcast %227 : vector<1x128xf32> to vector<16x128xf32>
    %229 = arith.mulf %226, %228 : vector<16x128xf32>
    %230 = arith.addf %220, %229 : vector<16x128xf32>
    %c0_106 = arith.constant 0 : index
    %c1_107 = arith.constant 1 : index
    %231 = vector.load %arg9[%c0_106, %c1_107] : memref<16x5xf32, #tpu.memory_space<vmem>>, vector<16x1xf32>
    %232 = vector.broadcast %231 : vector<16x1xf32> to vector<16x128xf32>
    %233 = arith.addf %230, %232 : vector<16x128xf32>
    %234 = arith.truncf %233 : vector<16x128xf32> to vector<16x128xbf16>
    %c32 = arith.constant 32 : index
    %c0_108 = arith.constant 0 : index
    %235 = vector.load %arg13[%c32, %c0_108] : memref<80x128xbf16, #tpu.memory_space<vmem>>, vector<16x128xbf16>
    tpu.vector_store %arg13[%c32, %c0_108], %234 {strides = array<i32>} : memref<80x128xbf16, #tpu.memory_space<vmem>>, vector<16x128xbf16>,
    %c0_109 = arith.constant 0 : index
    %c0_110 = arith.constant 0 : index
    %236 = vector.load %arg13[%c0_109, %c0_110] : memref<80x128xbf16, #tpu.memory_space<vmem>>, vector<48x128xbf16>
    %237 = arith.extf %236 : vector<48x128xbf16> to vector<48x128xf32>
    %c0_111 = arith.constant 0 : index
    %c2_112 = arith.constant 2 : index
    %238 = vector.load %arg10[%c0_111, %c2_112] : memref<80x5xf32, #tpu.memory_space<vmem>>, vector<48x1xf32>
    %239 = vector.broadcast %238 : vector<48x1xf32> to vector<48x128xf32>
    %240 = arith.mulf %237, %239 : vector<48x128xf32>
    %c0_113 = arith.constant 0 : index
    %c2_114 = arith.constant 2 : index
    %241 = vector.load %arg11[%c0_113, %c2_114] : memref<80x5xf32, #tpu.memory_space<vmem>>, vector<48x1xf32>
    %242 = vector.broadcast %241 : vector<48x1xf32> to vector<48x128xf32>
    %243 = arith.addf %240, %242 : vector<48x128xf32>
    %cst_115 = arith.constant 0.000000e+00 : f32
    %244 = vector.broadcast %cst_115 : f32 to vector<48x128xf32>
    %245 = arith.maximumf %243, %244 : vector<48x128xf32>
    %246 = arith.truncf %245 : vector<48x128xf32> to vector<48x128xbf16>
    %c0_116 = arith.constant 0 : index
    %c0_117 = arith.constant 0 : index
    %247 = vector.load %arg6[%c0_116, %c0_117] : memref<16x48xbf16, #tpu.memory_space<vmem>>, vector<16x48xbf16>
    %cst_118 = arith.constant dense<0.000000e+00> : vector<16x128xf32>
    %248 = tpu.matmul %247, %246, %cst_118 {dimension_numbers = #tpu.dot_dimension_numbers<[1], [0], [0], [1], [0, 0, 1, 1], [], []>} : vector<16x48xbf16>, vector<48x128xbf16>, vector<16x128xf32> -> vector<16x128xf32>
    %c0_119 = arith.constant 0 : index
    %c2_120 = arith.constant 2 : index
    %249 = vector.load %arg9[%c0_119, %c2_120] : memref<16x5xf32, #tpu.memory_space<vmem>>, vector<16x1xf32>
    %250 = vector.broadcast %249 : vector<16x1xf32> to vector<16x128xf32>
    %251 = arith.addf %248, %250 : vector<16x128xf32>
    %252 = arith.truncf %251 : vector<16x128xf32> to vector<16x128xbf16>
    %c48 = arith.constant 48 : index
    %c0_121 = arith.constant 0 : index
    %253 = vector.load %arg13[%c48, %c0_121] : memref<80x128xbf16, #tpu.memory_space<vmem>>, vector<16x128xbf16>
    tpu.vector_store %arg13[%c48, %c0_121], %252 {strides = array<i32>} : memref<80x128xbf16, #tpu.memory_space<vmem>>, vector<16x128xbf16>,
    %c0_122 = arith.constant 0 : index
    %c0_123 = arith.constant 0 : index
    %254 = vector.load %arg13[%c0_122, %c0_123] : memref<80x128xbf16, #tpu.memory_space<vmem>>, vector<64x128xbf16>
    %255 = arith.extf %254 : vector<64x128xbf16> to vector<64x128xf32>
    %c0_124 = arith.constant 0 : index
    %c3_125 = arith.constant 3 : index
    %256 = vector.load %arg10[%c0_124, %c3_125] : memref<80x5xf32, #tpu.memory_space<vmem>>, vector<64x1xf32>
    %257 = vector.broadcast %256 : vector<64x1xf32> to vector<64x128xf32>
    %258 = arith.mulf %255, %257 : vector<64x128xf32>
    %c0_126 = arith.constant 0 : index
    %c3_127 = arith.constant 3 : index
    %259 = vector.load %arg11[%c0_126, %c3_127] : memref<80x5xf32, #tpu.memory_space<vmem>>, vector<64x1xf32>
    %260 = vector.broadcast %259 : vector<64x1xf32> to vector<64x128xf32>
    %261 = arith.addf %258, %260 : vector<64x128xf32>
    %cst_128 = arith.constant 0.000000e+00 : f32
    %262 = vector.broadcast %cst_128 : f32 to vector<64x128xf32>
    %263 = arith.maximumf %261, %262 : vector<64x128xf32>
    %264 = arith.truncf %263 : vector<64x128xf32> to vector<64x128xbf16>
    %c0_129 = arith.constant 0 : index
    %c0_130 = arith.constant 0 : index
    %265 = vector.load %arg7[%c0_129, %c0_130] : memref<16x64xbf16, #tpu.memory_space<vmem>>, vector<16x64xbf16>
    %cst_131 = arith.constant dense<0.000000e+00> : vector<16x128xf32>
    %266 = tpu.matmul %265, %264, %cst_131 {dimension_numbers = #tpu.dot_dimension_numbers<[1], [0], [0], [1], [0, 0, 1, 1], [], []>} : vector<16x64xbf16>, vector<64x128xbf16>, vector<16x128xf32> -> vector<16x128xf32>
    %c0_132 = arith.constant 0 : index
    %c3_133 = arith.constant 3 : index
    %267 = vector.load %arg9[%c0_132, %c3_133] : memref<16x5xf32, #tpu.memory_space<vmem>>, vector<16x1xf32>
    %268 = vector.broadcast %267 : vector<16x1xf32> to vector<16x128xf32>
    %269 = arith.addf %266, %268 : vector<16x128xf32>
    %270 = arith.truncf %269 : vector<16x128xf32> to vector<16x128xbf16>
    %c64 = arith.constant 64 : index
    %c0_134 = arith.constant 0 : index
    %271 = vector.load %arg13[%c64, %c0_134] : memref<80x128xbf16, #tpu.memory_space<vmem>>, vector<16x128xbf16>
    tpu.vector_store %arg13[%c64, %c0_134], %270 {strides = array<i32>} : memref<80x128xbf16, #tpu.memory_space<vmem>>, vector<16x128xbf16>,
    %c0_135 = arith.constant 0 : index
    %c0_136 = arith.constant 0 : index
    %272 = vector.load %arg13[%c0_135, %c0_136] : memref<80x128xbf16, #tpu.memory_space<vmem>>, vector<80x128xbf16>
    %273 = arith.extf %272 : vector<80x128xbf16> to vector<80x128xf32>
    %c0_137 = arith.constant 0 : index
    %c4_138 = arith.constant 4 : index
    %274 = vector.load %arg10[%c0_137, %c4_138] : memref<80x5xf32, #tpu.memory_space<vmem>>, vector<80x1xf32>
    %275 = vector.broadcast %274 : vector<80x1xf32> to vector<80x128xf32>
    %276 = arith.mulf %273, %275 : vector<80x128xf32>
    %c0_139 = arith.constant 0 : index
    %c4_140 = arith.constant 4 : index
    %277 = vector.load %arg11[%c0_139, %c4_140] : memref<80x5xf32, #tpu.memory_space<vmem>>, vector<80x1xf32>
    %278 = vector.broadcast %277 : vector<80x1xf32> to vector<80x128xf32>
    %279 = arith.addf %276, %278 : vector<80x128xf32>
    %cst_141 = arith.constant 0.000000e+00 : f32
    %280 = vector.broadcast %cst_141 : f32 to vector<80x128xf32>
    %281 = arith.maximumf %279, %280 : vector<80x128xf32>
    %282 = arith.truncf %281 : vector<80x128xf32> to vector<80x128xbf16>
    %c0_142 = arith.constant 0 : index
    %c0_143 = arith.constant 0 : index
    %283 = vector.load %arg8[%c0_142, %c0_143] : memref<16x80xbf16, #tpu.memory_space<vmem>>, vector<16x80xbf16>
    %cst_144 = arith.constant dense<0.000000e+00> : vector<16x128xf32>
    %284 = tpu.matmul %283, %282, %cst_144 {dimension_numbers = #tpu.dot_dimension_numbers<[1], [0], [0], [1], [0, 0, 1, 1], [], []>} : vector<16x80xbf16>, vector<80x128xbf16>, vector<16x128xf32> -> vector<16x128xf32>
    %c0_145 = arith.constant 0 : index
    %c4_146 = arith.constant 4 : index
    %285 = vector.load %arg9[%c0_145, %c4_146] : memref<16x5xf32, #tpu.memory_space<vmem>>, vector<16x1xf32>
    %286 = vector.broadcast %285 : vector<16x1xf32> to vector<16x128xf32>
    %287 = arith.addf %284, %286 : vector<16x128xf32>
    %288 = arith.addf %287, %43 : vector<16x128xf32>
    %c0_147 = arith.constant 0 : index
    %c0_148 = arith.constant 0 : index
    %289 = vector.load %arg12[%c0_147, %c0_148] : memref<16x128xf32, #tpu.memory_space<vmem>>, vector<16x128xf32>
    tpu.vector_store %arg12[%c0_147, %c0_148], %288 {strides = array<i32>} : memref<16x128xf32, #tpu.memory_space<vmem>>, vector<16x128xf32>,
    return
  }
  func.func @transform_0(%arg0: i32) -> (i32, i32) {
    %c0_i32 = arith.constant 0 : i32
    %c0_i32_0 = arith.constant 0 : i32
    return %c0_i32, %arg0 : i32, i32
  }
  func.func @transform_1(%arg0: i32) -> (i32, i32) {
    %c0_i32 = arith.constant 0 : i32
    %c0_i32_0 = arith.constant 0 : i32
    %c0_i32_1 = arith.constant 0 : i32
    return %c0_i32, %c0_i32_0 : i32, i32
  }
  func.func @transform_2(%arg0: i32) -> (i32, i32) {
    %c0_i32 = arith.constant 0 : i32
    %c0_i32_0 = arith.constant 0 : i32
    %c0_i32_1 = arith.constant 0 : i32
    return %c0_i32, %c0_i32_0 : i32, i32
  }
  func.func @transform_3(%arg0: i32) -> (i32, i32, i32) {
    %c0_i32 = arith.constant 0 : i32
    %c0_i32_0 = arith.constant 0 : i32
    %c0_i32_1 = arith.constant 0 : i32
    %c0_i32_2 = arith.constant 0 : i32
    return %c0_i32, %c0_i32_0, %c0_i32_1 : i32, i32, i32
  }
  func.func @transform_4(%arg0: i32) -> (i32, i32, i32) {
    %c0_i32 = arith.constant 0 : i32
    %c0_i32_0 = arith.constant 0 : i32
    %c0_i32_1 = arith.constant 0 : i32
    %c0_i32_2 = arith.constant 0 : i32
    return %c0_i32, %c0_i32_0, %c0_i32_1 : i32, i32, i32
  }
  func.func @transform_5(%arg0: i32) -> (i32, i32) {
    %c0_i32 = arith.constant 0 : i32
    %c0_i32_0 = arith.constant 0 : i32
    %c0_i32_1 = arith.constant 0 : i32
    return %c0_i32, %c0_i32_0 : i32, i32
  }
  func.func @transform_6(%arg0: i32) -> (i32, i32) {
    %c0_i32 = arith.constant 0 : i32
    %c0_i32_0 = arith.constant 0 : i32
    %c0_i32_1 = arith.constant 0 : i32
    return %c0_i32, %c0_i32_0 : i32, i32
  }
  func.func @transform_7(%arg0: i32) -> (i32, i32) {
    %c0_i32 = arith.constant 0 : i32
    %c0_i32_0 = arith.constant 0 : i32
    %c0_i32_1 = arith.constant 0 : i32
    return %c0_i32, %c0_i32_0 : i32, i32
  }
  func.func @transform_8(%arg0: i32) -> (i32, i32) {
    %c0_i32 = arith.constant 0 : i32
    %c0_i32_0 = arith.constant 0 : i32
    %c0_i32_1 = arith.constant 0 : i32
    return %c0_i32, %c0_i32_0 : i32, i32
  }
  func.func @transform_9(%arg0: i32) -> (i32, i32) {
    %c0_i32 = arith.constant 0 : i32
    %c0_i32_0 = arith.constant 0 : i32
    %c0_i32_1 = arith.constant 0 : i32
    return %c0_i32, %c0_i32_0 : i32, i32
  }
  func.func @transform_10(%arg0: i32) -> (i32, i32) {
    %c0_i32 = arith.constant 0 : i32
    %c0_i32_0 = arith.constant 0 : i32
    %c0_i32_1 = arith.constant 0 : i32
    return %c0_i32, %c0_i32_0 : i32, i32
  }
  func.func @transform_11(%arg0: i32) -> (i32, i32) {
    %c0_i32 = arith.constant 0 : i32
    %c0_i32_0 = arith.constant 0 : i32
    return %c0_i32, %arg0 : i32, i32
  }
}

</mosaic_0001>

<bundles_post_ra>
// kernel: tpu_custom_call.1
= control target key start
LH: loop header
LB: loop body
LE: loop exit
PB: predicated region body
PF: predicated region fallthrough
CT: control target
= control target key end

     0   :  { %vm85_vm0 = vcmask 1043456   ;;  %v2378_v1 = vmov 0.0   ;;  %vm2379_vm1 = vmmov 0   ;;  %vm81_vm2 = vcmask 64512   ;;  %s3026_s0 = inlined_call_operand.vmem [shape: bf16[8,128], index: 0, kind: input, shape index: {}]   ;;  %s3027_s1 = inlined_call_operand.vmem [shape: bf16[16,8], index: 1, kind: input, shape index: {}]   ;;  %s3028_s2 = inlined_call_operand.vmem [shape: f32[16,1], index: 2, kind: input, shape index: {}]   ;;  %s3029_s3 = inlined_call_operand.vmem [shape: bf16[9,16,16], index: 3, kind: input, shape index: {}]   ;;  %s3030_s4 = inlined_call_operand.vmem [shape: bf16[9,16,32], index: 4, kind: input, shape index: {}]   ;;  %s3031_s5 = inlined_call_operand.vmem [shape: bf16[16,48], index: 5, kind: input, shape index: {}]   ;;  %s3032_s6 = inlined_call_operand.vmem [shape: bf16[16,64], index: 6, kind: input, shape index: {}]   ;;  %s3033_s7 = inlined_call_operand.vmem [shape: bf16[16,80], index: 7, kind: input, shape index: {}]   ;;  %s3034_s8 = inlined_call_operand.vmem [shape: f32[16,5], index: 8, kind: input, shape index: {}]   ;;  %s3035_s9 = inlined_call_operand.vmem [shape: f32[80,5], index: 9, kind: input, shape index: {}]   ;;  %s3036_s10 = inlined_call_operand.vmem [shape: f32[80,5], index: 10, kind: input, shape index: {}]   ;;  %s3037_s11 = inlined_call_operand.hbm [shape: f32[16,128], index: 11, kind: output, shape index: {}]  }
   0x1   :  { %v63_v0 = vld [vmem:[%s3026_s0] sm:$0xf]  ;;  %2131 = vmatprep.subr.bf16.mxu0 %v2378_v1  ;;  %2133 = vmatprep.mubr.msk.bf16.mxu0 %vm2379_vm1, %v2378_v1  ;;  %v2380_v6 = vmov 0   ;;  %v65_v7 = vld [vmem:[%s3028_s2 + $0x8] sm:$0xff] }
   0x2   :  { %v87_v2 = vsel %vm85_vm0, %v63_v0, 0  ;;  %v2332_v3 = vld [vmem:[%s3027_s1] sm:$0xff]   ;;  %2137 = vmatprep.subr.bf16.mxu1 %v2378_v1  ;;  %2316 = vset.pattern.permute.xlu0 %v2380_v6  ;;  %v2479_v8 = vld [vmem:[%s3035_s9 + $0x8] sm:$0xff] }
   0x3   :  { %2132 = vmatpush3.bf16.msra.mxu0 %v87_v2  ;;  %v64_v4 = vld [vmem:[%s3028_s2] sm:$0xff]  ;;  %2317 = vset.pattern.permute.xlu1 %v2380_v6  ;;  %v2495_v10 = vld [vmem:[%s3036_s10 + $0x8] sm:$0xff] }
   0x4   :  { %v2470_v5 = vld [vmem:[%s3035_s9] sm:$0xff]  ;;  %68 = vperm.xlu0 %2316, %v64_v4   ;;  %2143 = vmatprep.subr.bf16.mxu0 %v2378_v1 }
   0x5   :  { %139 = vperm.xlu1 %2317, %v2470_v5   ;;  %2139 = vmatprep.mubr.msk.bf16.mxu1 %vm2379_vm1, %v2378_v1  ;;  %v2490_v9 = vld [vmem:[%s3036_s10] sm:$0xff] }
   0x6   :  { %2134 = vmatmul.mubr.msk.bf16.vlgmr.msra.gmra.mrb[0].mxu0 %vm81_vm2, %v2332_v3 }
   0x7   :  { %2145 = vmatprep.mubr.msk.bf16.mxu0 %vm2379_vm1, %v2378_v1 }
   0x8   :  { %73 = vperm.xlu0 %2316, %v65_v7  }
   0x9   :  { %144 = vperm.xlu1 %2317, %v2479_v8  }
   0xc   :  { %153 = vperm.xlu0 %2316, %v2490_v9  }
   0xd   :  { %158 = vperm.xlu1 %2317, %v2495_v10  }
   0xe   :  { %16 = vsyncpa [#allocation4], 0  ;;  %s2381_s30 = smov 8   ;;  %s2382_s12 = smov 9   ;;  %v2523_v33 = vld [vmem:[%s3034_s8 + $0x8] sm:$0xff]  ;;  %v2528_v34 = vld [vmem:[%s3034_s8] sm:$0xff] }
   0xf   :  { %s2383_s13 = smov 1   ;;  %s2384_s14 = smov 7   ;;  %v2389_v35 = vmov 1   ;;  %v2541_v36 = vld [vmem:[%s3035_s9 + $0x10] sm:$0xff]  ;;  %v2553_v38 = vld [vmem:[%s3035_s9 + $0x18] sm:$0xff]  ;;  %v2333_v42 = vld [vmem:[%s3029_s3 + $0x8] sm:$0xff]  }
  0x10   :  { %s2385_s15 = smov 121   ;;  %s2386_s16 = smov 127   ;;  %v2547_v37 = vld [vmem:[%s3036_s10 + $0x10] sm:$0xff]  ;;  %v2559_v39 = vld [vmem:[%s3036_s10 + $0x18] sm:$0xff]  ;;  %v2334_v43 = vld [vmem:[%s3029_s3] sm:$0xff]   ;;  %vm178_vm3 = vcmask 130048  }
  0x11   :  { %s2387_s17 = smov 119   ;;  %s2388_s18 = smov 120   ;;  %v2335_v46 = vld [vmem:[%s3029_s3 + $0x18] sm:$0xff]   ;;  %v2336_v47 = vld [vmem:[%s3029_s3 + $0x10] sm:$0xff]   ;;  %v2337_v49 = vld [vmem:[%s3029_s3 + $0x20] sm:$0xff]   ;;  %vm804_vm8 = vcmask 261120  }
  0x12   :  { %v2338_v50 = vld [vmem:[%s3029_s3 + $0x28] sm:$0xff]   ;;  %v2339_v53 = vld [vmem:[%s3029_s3 + $0x30] sm:$0xff]   ;;  %v2340_v54 = vld [vmem:[%s3029_s3 + $0x38] sm:$0xff]   ;;  %vm1490_vm9 = vcmask 392192   ;;  %vm1692_vm10 = vcmask 523264   ;;  %vm1928_vm11 = vcmask 654336  }
  0x13   :  { %v2341_v58 = vld [vmem:[%s3029_s3 + $0x40] sm:$0xff]  }
  0x83   :  { %v69_v11 = vpop.permute.xlu0 %68 }
  0x84   :  { %v140_v12 = vpop.permute.xlu1 %139 }
  0x87   :  { %v74_v15 = vpop.permute.xlu0 %73 }
  0x88   :  { %v145_v20 = vpop.permute.xlu1 %144 }
  0x8b   :  { %v154_v26 = vpop.permute.xlu0 %153 }
  0x8c   :  { %v159_v27 = vpop.permute.xlu1 %158 }
  0xd9   :  { %v123_v13 = vpop.f32.mrb[0].mxu0 }
  0xda   :  { %v2135_v14 = vpop.f32.mrb[1].mxu0  ;;  %v2500_v17 = vadd.f32 %v123_v13, %v69_v11 }
  0xdb   :  { %v126_v16 = vpop.f32.mrb[2].mxu0  ;;  %v2390_v14 = vmov 2  }
  0xdc   :  { %v2502_v18 = vadd.f32 %v126_v16, %v74_v15  ;;  %v2136_v19 = vpop.f32.mrb[3].mxu0  ;;  %v40_v15 = vlaneseq }
  0xde   :  { %v130_v21 = vpack.c.bf16 %v2502_v18, %v2500_v17  ;;  %v41_v19 = vand.u32 127, %v40_v15 }
  0xe0   :  { %v2506_v22 = vunpack.c.l.bf16 %v130_v21  ;;  %v2508_v23 = vunpack.c.h.bf16 %v130_v21 }
  0xe2   :  { %v147_v24 = vmul.f32 %v140_v12, %v2506_v22  ;;  %v148_v25 = vmul.f32 %v145_v20, %v2508_v23  ;;  %v42_v20 = vcvt.s32.f32 %v41_v19 }
  0xe4   :  { %v161_v28 = vadd.f32 %v154_v26, %v147_v24  ;;  %v162_v29 = vadd.f32 %v159_v27, %v148_v25  ;;  %v43_v21 = vadd.f32 0.5, %v42_v20 }
  0xe6   :  { %v163_v30 = vmax.f32 %v161_v28, 0.0  ;;  %v164_v31 = vmax.f32 %v162_v29, 0.0  ;;  %v44_v24 = vmul.f32 0.125, %v43_v21 }
  0xe8   :  { %v165_v32 = vpack.c.bf16 %v164_v31, %v163_v30  ;;  %v45_v25 = vfloor.f32 %v44_v24 }
  0xea   :  { %229 = vrot.lane.b32.xlu1 %v165_v32, %s2381_s30  ;;  %169 = vrot.lane.b32.xlu0 %v165_v32, %s2382_s12  ;;  %v48_v26 = vadd.f32 0.5, %v45_v25  ;;  %v46_v29 = vmul.f32 8.0, %v45_v25 }
  0xec   :  { %v49_v27 = vmul.f32 0.125, %v48_v26  ;;  %v47_v31 = vsub.f32 %v42_v20, %v46_v29 }
  0xee   :  { %350 = vrot.lane.b32.xlu1 %v165_v32, %s2383_s13  ;;  %289 = vrot.lane.b32.xlu0 %v165_v32, %s2384_s14  ;;  %v50_v28 = vfloor.f32 %v49_v27  ;;  %vm57_vm5 = vcmp.ge.f32.partialorder %v47_v31, 0.5  ;;  %vm59_vm6 = vcmp.le.f32.partialorder %v47_v31, 6.5 }
  0xf0   :  { %v51_v30 = vmul.f32 8.0, %v50_v28 }
  0xf2   :  { %524 = vrot.lane.b32.xlu1 %v165_v32, %s2385_s15  ;;  %464 = vrot.lane.b32.xlu0 %v165_v32, %s2386_s16 }
  0xf6   :  { %645 = vrot.lane.b32.xlu1 %v165_v32, %s2387_s17  ;;  %585 = vrot.lane.b32.xlu0 %v165_v32, %s2388_s18 }
  0xfa   :  { %712 = vperm.xlu1 %2317, %v2523_v33   ;;  %707 = vperm.xlu0 %2316, %v2528_v34  }
  0xfe   :  { %2319 = vset.pattern.permute.xlu1 %v2389_v35  ;;  %2318 = vset.pattern.permute.xlu0 %v2389_v35 }
  0xff   :  { %736 = vperm.xlu1 %2319, %v2479_v8   ;;  %731 = vperm.xlu0 %2318, %v2470_v5  }
 0x103   :  { %759 = vperm.xlu1 %2319, %v2490_v9   ;;  %764 = vperm.xlu0 %2318, %v2495_v10  }
 0x107   :  { %741 = vperm.xlu1 %2319, %v2541_v36   ;;  %746 = vperm.xlu0 %2318, %v2553_v38  }
 0x10b   :  { %769 = vperm.xlu1 %2319, %v2547_v37   ;;  %774 = vperm.xlu0 %2318, %v2559_v39  }
 0x10f   :  { %2320 = vset.pattern.permute.xlu1 %v2390_v14  ;;  %2321 = vset.pattern.permute.xlu0 %v2390_v14 }
 0x15c   :  { %v230_v40 = vpop.permute.xlu1 %229  ;;  %v170_v41 = vpop.permute.xlu0 %169 }
 0x15d   :  { %2138 = vmatpush3.bf16.msra.mxu1 %v170_v41  ;;  %2144 = vmatpush3.bf16.msra.mxu0 %v230_v40  ;;  %v2649_v41 = vsel %vm57_vm5, 1.0, %v2378_v1 }
 0x15e   :  { %2155 = vmatprep.subr.bf16.mxu0 %v2378_v1  ;;  %2149 = vmatprep.subr.bf16.mxu1 %v2378_v1 }
 0x160   :  { %2146 = vmatmul.mubr.msk.bf16.vlgmr.msra.gmra.mrb[4].mxu0 %vm178_vm3, %v2333_v42  ;;  %v351_v44 = vpop.permute.xlu1 %350  ;;  %2140 = vmatmul.mubr.msk.bf16.vlgmr.msra.gmra.mrb[0].mxu1 %vm178_vm3, %v2334_v43  ;;  %v290_v45 = vpop.permute.xlu0 %289 }
 0x161   :  { %2150 = vmatpush3.bf16.msra.mxu1 %v290_v45  ;;  %2156 = vmatpush3.bf16.msra.mxu0 %v351_v44 }
 0x162   :  { %2151 = vmatprep.mubr.msk.bf16.mxu1 %vm2379_vm1, %v2378_v1  ;;  %2157 = vmatprep.mubr.msk.bf16.mxu0 %vm2379_vm1, %v2378_v1 }
 0x163   :  { %2161 = vmatprep.subr.bf16.mxu1 %v2378_v1  ;;  %2167 = vmatprep.subr.bf16.mxu0 %v2378_v1 }
 0x164   :  { %v465_v48 = vpop.permute.xlu0 %464  ;;  %v525_v51 = vpop.permute.xlu1 %524 }
 0x168   :  { %2158 = vmatmul.mubr.msk.bf16.vlgmr.msra.gmra.mrb[8].mxu0 %vm178_vm3, %v2335_v46  ;;  %2152 = vmatmul.mubr.msk.bf16.vlgmr.msra.gmra.mrb[4].mxu1 %vm178_vm3, %v2336_v47  ;;  %v586_v52 = vpop.permute.xlu0 %585  ;;  %v646_v55 = vpop.permute.xlu1 %645 }
 0x169   :  { %2162 = vmatpush3.bf16.msra.mxu1 %v165_v32  ;;  %2168 = vmatpush3.bf16.msra.mxu0 %v465_v48  ;;  %v52_v32 = vsub.f32 %v45_v25, %v51_v30 }
 0x16a   :  { %2163 = vmatprep.mubr.msk.bf16.mxu1 %vm2379_vm1, %v2378_v1  ;;  %2169 = vmatprep.mubr.msk.bf16.mxu0 %vm2379_vm1, %v2378_v1 }
 0x16b   :  { %2173 = vmatprep.subr.bf16.mxu1 %v2378_v1  ;;  %2179 = vmatprep.subr.bf16.mxu0 %v2378_v1  ;;  %vm53_vm4 = vcmp.ge.f32.partialorder %v52_v32, 0.5  ;;  %vm55_vm7 = vcmp.le.f32.partialorder %v52_v32, 6.5 }
 0x16c   :  { %v2646_v40 = vsel %vm53_vm4, 1.0, %v2378_v1 }
 0x16d   :  { %v2653_v42 = vmul.f32 %v2649_v41, %v2646_v40 }
 0x170   :  { %2164 = vmatmul.mubr.msk.bf16.vlgmr.msra.gmra.mrb[8].mxu1 %vm178_vm3, %v2337_v49  ;;  %2170 = vmatmul.mubr.msk.bf16.vlgmr.msra.gmra.mrb[12].mxu0 %vm178_vm3, %v2338_v50 }
 0x171   :  { %2174 = vmatpush3.bf16.msra.mxu1 %v525_v51  ;;  %2180 = vmatpush3.bf16.msra.mxu0 %v586_v52  ;;  %v2658_v51 = vsel %vm59_vm6, 1.0, %v2378_v1 }
 0x172   :  { %2175 = vmatprep.mubr.msk.bf16.mxu1 %vm2379_vm1, %v2378_v1  ;;  %2185 = vmatprep.subr.bf16.mxu1 %v2378_v1 }
 0x173   :  { %2181 = vmatprep.mubr.msk.bf16.mxu0 %vm2379_vm1, %v2378_v1  ;;  %2191 = vmatprep.subr.bf16.mxu0 %v2378_v1 }
 0x178   :  { %2176 = vmatmul.mubr.msk.bf16.vlgmr.msra.gmra.mrb[12].mxu1 %vm178_vm3, %v2339_v53  ;;  %2182 = vmatmul.mubr.msk.bf16.vlgmr.msra.gmra.mrb[16].mxu0 %vm178_vm3, %v2340_v54 }
 0x179   :  { %2186 = vmatpush3.bf16.msra.mxu1 %v646_v55  ;;  %v2614_v56 = vpop.permute.xlu1 %712  ;;  %v2616_v57 = vpop.permute.xlu0 %707  ;;  %2187 = vmatprep.mubr.msk.bf16.mxu1 %vm2379_vm1, %v2378_v1 }
 0x17a   :  { %2199 = vmatprep.subr.bf16.mxu1 %v2378_v1  ;;  %2195 = vmatprep.mubr.msk.bf16.mxu0 %vm2379_vm1, %v2378_v1 }
 0x17e   :  { %v737_v59 = vpop.permute.xlu1 %736  ;;  %v732_v60 = vpop.permute.xlu0 %731 }
 0x17f   :  { %v750_v61 = vmul.f32 %v737_v59, %v2508_v23  ;;  %v749_v62 = vmul.f32 %v732_v60, %v2506_v22  ;;  %v2664_v60 = vmul.f32 %v2658_v51, %v2646_v40 }
 0x180   :  { %2188 = vmatmul.mubr.msk.bf16.vlgmr.msra.gmra.mrb[16].mxu1 %vm178_vm3, %v2341_v58 }
 0x181   :  { %2203 = vmatprep.mubr.msk.bf16.mxu1 %vm2379_vm1, %v2378_v1 }
 0x182   :  { %v760_v63 = vpop.permute.xlu1 %759  ;;  %v765_v0 = vpop.permute.xlu0 %764 }
 0x183   :  { %v777_v2 = vadd.f32 %v760_v63, %v749_v62  ;;  %v778_v3 = vadd.f32 %v765_v0, %v750_v61 }
 0x185   :  { %v781_v4 = vmax.f32 %v777_v2, 0.0  ;;  %v782_v6 = vmax.f32 %v778_v3, 0.0 }
 0x186   :  { %v2637_v11 = vpop.permute.xlu1 %741 }
 0x187   :  { %v2631_v7 = vpack.c.bf16 %v782_v6, %v781_v4 }
 0x189   :  { %791 = vrot.lane.b32.xlu1 %v2631_v7, %s2382_s12 }
 0x18a   :  { %v2639_v12 = vpop.permute.xlu1 %769 }
 0x18d   :  { %854 = vrot.lane.b32.xlu1 %v2631_v7, %s2381_s30 }
 0x1fb   :  { %v792_v13 = vpop.permute.xlu1 %791 }
 0x1fc   :  { %2192 = vmatpush3.bf16.msra.mxu0 %v792_v13 }
 0x1fd   :  { %2193 = vmatprep.subr.bf16.mxu0 %v2378_v1 }
 0x1ff   :  { %v855_v16 = vpop.permute.xlu1 %854 }
 0x200   :  { %2200 = vmatpush3.bf16.msra.mxu1 %v855_v16 }
 0x201   :  { %2201 = vmatprep.subr.bf16.mxu1 %v2378_v1 }
 0x233   :  { %v216_v43 = vpop.f32.mrb[0].mxu1  ;;  %v275_v44 = vpop.f32.mrb[4].mxu0 }
 0x234   :  { %v224_v45 = vmul.f32 %v2653_v42, %v216_v43  ;;  %v282_v46 = vmul.f32 %v275_v44, %v2646_v40  ;;  %v2141_v47 = vpop.f32.mrb[1].mxu1  ;;  %v2147_v48 = vpop.f32.mrb[5].mxu0 }
 0x235   :  { %v219_v49 = vpop.f32.mrb[2].mxu1  ;;  %v278_v50 = vpop.f32.mrb[6].mxu0 }
 0x236   :  { %v284_v52 = vadd.f32 %v282_v46, %v224_v45  ;;  %v225_v53 = vmul.f32 %v2653_v42, %v219_v49  ;;  %v283_v54 = vmul.f32 %v278_v50, %v2646_v40  ;;  %v2142_v55 = vpop.f32.mrb[3].mxu1  ;;  %v2148_v58 = vpop.f32.mrb[7].mxu0  ;;  %v2672_v45 = vsel %vm55_vm7, 1.0, %v2378_v1 }
 0x237   :  { %v2677_v32 = vmul.f32 %v2649_v41, %v2672_v45 }
 0x238   :  { %v285_v59 = vadd.f32 %v283_v54, %v225_v53 }
 0x23b   :  { %v335_v61 = vpop.f32.mrb[4].mxu1  ;;  %v396_v62 = vpop.f32.mrb[8].mxu0 }
 0x23c   :  { %v343_v63 = vmul.f32 %v2664_v60, %v335_v61  ;;  %v2153_v0 = vpop.f32.mrb[5].mxu1  ;;  %v403_v2 = vmul.f32 %v396_v62, %v2649_v41  ;;  %v2159_v3 = vpop.f32.mrb[9].mxu0 }
 0x23d   :  { %v338_v4 = vpop.f32.mrb[6].mxu1  ;;  %v399_v6 = vpop.f32.mrb[10].mxu0 }
 0x23e   :  { %v345_v13 = vadd.f32 %v343_v63, %v284_v52  ;;  %v344_v15 = vmul.f32 %v2664_v60, %v338_v4  ;;  %v2154_v16 = vpop.f32.mrb[7].mxu1  ;;  %v404_v19 = vmul.f32 %v399_v6, %v2649_v41  ;;  %v2160_v20 = vpop.f32.mrb[11].mxu0 }
 0x23f   :  { %v2685_v16 = vmul.f32 %v2658_v51, %v2672_v45 }
 0x240   :  { %v346_v21 = vadd.f32 %v344_v15, %v285_v59  ;;  %v405_v24 = vadd.f32 %v403_v2, %v345_v13 }
 0x242   :  { %v406_v25 = vadd.f32 %v404_v19, %v346_v21 }
 0x243   :  { %v452_v26 = vpop.f32.mrb[8].mxu1  ;;  %v510_v27 = vpop.f32.mrb[12].mxu0 }
 0x244   :  { %v459_v28 = vadd.f32 %v452_v26, %v405_v24  ;;  %v517_v29 = vmul.f32 %v510_v27, %v2658_v51  ;;  %v2165_v30 = vpop.f32.mrb[9].mxu1  ;;  %v2171_v31 = vpop.f32.mrb[13].mxu0 }
 0x245   :  { %v455_v43 = vpop.f32.mrb[10].mxu1  ;;  %v513_v44 = vpop.f32.mrb[14].mxu0 }
 0x246   :  { %v519_v46 = vadd.f32 %v517_v29, %v459_v28  ;;  %v460_v47 = vadd.f32 %v455_v43, %v406_v25  ;;  %v518_v48 = vmul.f32 %v513_v44, %v2658_v51  ;;  %v2166_v49 = vpop.f32.mrb[11].mxu1  ;;  %v2172_v50 = vpop.f32.mrb[15].mxu0 }
 0x247   :  { %v747_v43 = vpop.permute.xlu0 %746 }
 0x248   :  { %v520_v52 = vadd.f32 %v518_v48, %v460_v47 }
 0x24b   :  { %v570_v53 = vpop.f32.mrb[12].mxu1  ;;  %v631_v54 = vpop.f32.mrb[16].mxu0 }
 0x24c   :  { %v578_v55 = vmul.f32 %v2677_v32, %v570_v53  ;;  %v2177_v58 = vpop.f32.mrb[13].mxu1  ;;  %v638_v59 = vmul.f32 %v631_v54, %v2672_v45  ;;  %v2183_v61 = vpop.f32.mrb[17].mxu0 }
 0x24d   :  { %v573_v62 = vpop.f32.mrb[14].mxu1  ;;  %v634_v63 = vpop.f32.mrb[18].mxu0  ;;  %v2391_v58 = vmov 3   ;;  %v2392_v61 = vmov 4  }
 0x24e   :  { %v580_v0 = vadd.f32 %v578_v55, %v519_v46  ;;  %v579_v2 = vmul.f32 %v2677_v32, %v573_v62  ;;  %v2178_v3 = vpop.f32.mrb[15].mxu1  ;;  %v639_v4 = vmul.f32 %v634_v63, %v2672_v45  ;;  %v2184_v6 = vpop.f32.mrb[19].mxu0  ;;  %v1611_v62 = vld [vmem:[%s3036_s10 + $0x30] sm:$0xff]  ;;  %v2342_v63 = vld [vmem:[%s3030_s4 + $0x8] sm:$0xff]  }
 0x24f   :  { %v775_v50 = vpop.permute.xlu0 %774  ;;  %v2346_v6 = vld [vmem:[%s3030_s4 + $0x20] sm:$0xff]  }
 0x250   :  { %v581_v13 = vadd.f32 %v579_v2, %v520_v52  ;;  %v640_v15 = vadd.f32 %v638_v59, %v580_v0  ;;  %v2791_v59 = vld [vmem:[%s3035_s9 + $0x30] sm:$0xff]  ;;  %v2345_v0 = vld [vmem:[%s3030_s4 + $0x18] sm:$0xff]   ;;  %v2834_v2 = vld [vmem:[%s3034_s8 + $0x8] sm:$0xff] }
 0x252   :  { %v641_v19 = vadd.f32 %v639_v4, %v581_v13 }
 0x253   :  { %v691_v20 = vpop.f32.mrb[16].mxu1 }
 0x254   :  { %v699_v21 = vmul.f32 %v2685_v16, %v691_v20  ;;  %v2189_v24 = vpop.f32.mrb[17].mxu1 }
 0x255   :  { %v694_v25 = vpop.f32.mrb[18].mxu1  ;;  %v2349_v24 = vld [vmem:[%s3030_s4 + $0x38] sm:$0xff]  }
 0x256   :  { %v701_v26 = vadd.f32 %v699_v21, %v640_v15  ;;  %v700_v27 = vmul.f32 %v2685_v16, %v694_v25  ;;  %v2190_v28 = vpop.f32.mrb[19].mxu1 }
 0x258   :  { %v702_v29 = vadd.f32 %v700_v27, %v641_v19  ;;  %v715_v30 = vadd.f32 %v2616_v57, %v701_v26  ;;  %v2348_v19 = vld [vmem:[%s3030_s4 + $0x30] sm:$0xff]   ;;  %v2350_v26 = vld [vmem:[%s3030_s4 + $0x40] sm:$0xff]  }
 0x25a   :  { %v716_v31 = vadd.f32 %v2614_v56, %v702_v29  ;;  %v2747_v56 = vld [vmem:[%s3035_s9 + $0x28] sm:$0xff] }
 0x25c   :  { %v717_v44 = vpack.c.bf16 %v716_v31, %v715_v30 }
 0x25e   :  { %v2691_v46 = vunpack.c.l.bf16 %v717_v44  ;;  %v2693_v47 = vunpack.c.h.bf16 %v717_v44 }
 0x260   :  { %v751_v48 = vmul.f32 %v2637_v11, %v2691_v46  ;;  %v752_v49 = vmul.f32 %v747_v43, %v2693_v47  ;;  %v2752_v11 = vld [vmem:[%s3036_s10 + $0x20] sm:$0xff] }
 0x262   :  { %v779_v52 = vadd.f32 %v2639_v12, %v751_v48  ;;  %v780_v53 = vadd.f32 %v775_v50, %v752_v49  ;;  %v1425_v12 = vld [vmem:[%s3036_s10 + $0x28] sm:$0xff] }
 0x264   :  { %v783_v54 = vmax.f32 %v779_v52, 0.0  ;;  %v784_v55 = vmax.f32 %v780_v53, 0.0 }
 0x266   :  { %v2699_v57 = vpack.c.bf16 %v784_v55, %v783_v54 }
 0x268   :  { %856 = vrot.lane.b32.xlu1 %v2699_v57, %s2381_s30  ;;  %793 = vrot.lane.b32.xlu0 %v2699_v57, %s2382_s12 }
 0x26c   :  { %982 = vrot.lane.b32.xlu1 %v2631_v7, %s2383_s13  ;;  %918 = vrot.lane.b32.xlu0 %v2631_v7, %s2384_s14 }
 0x270   :  { %1100 = vrot.lane.b32.xlu1 %v2631_v7, %s2386_s16  ;;  %920 = vrot.lane.b32.xlu0 %v2699_v57, %s2384_s14 }
 0x274   :  { %1102 = vrot.lane.b32.xlu1 %v2699_v57, %s2386_s16  ;;  %984 = vrot.lane.b32.xlu0 %v2699_v57, %s2383_s13  ;;  %s2393_s13 = smov [#allocation3]  }
 0x275   :  { %s1982_s14 = sshll.u32 %s2393_s13, 4  ;;  %s1983_s14 = int_to_ptr.vmem [resolvable:$true] %s1982_s14 }
 0x276   :  { %p2359_p1 = scmp.lt.s32.totalorder %s1983_s14, %s1983_s14 }
 0x278   :  { %1228 = vrot.lane.b32.xlu1 %v2631_v7, %s2388_s18  ;;  %1164 = vrot.lane.b32.xlu0 %v2631_v7, %s2385_s15 }
 0x27c   :  { %1230 = vrot.lane.b32.xlu1 %v2699_v57, %s2388_s18  ;;  %1166 = vrot.lane.b32.xlu0 %v2699_v57, %s2385_s15 }
 0x280   :  { %1386 = vperm.xlu1 %2320, %v2470_v5   ;;  %1292 = vrot.lane.b32.xlu0 %v2631_v7, %s2387_s17 }
 0x284   :  { %2322 = vset.pattern.permute.xlu1 %v2389_v35  ;;  %1294 = vrot.lane.b32.xlu0 %v2699_v57, %s2387_s17  ;;  %v1382_v35 = vld [vmem:[%s3035_s9 + $0x20] sm:$0xff] }
 0x285   :  { %1357 = vperm.xlu1 %2322, %v2528_v34  }
 0x288   :  { %1391 = vperm.xlu0 %2321, %v2479_v8  }
 0x289   :  { %1362 = vperm.xlu1 %2322, %v2523_v33  }
 0x28c   :  { %1428 = vperm.xlu0 %2321, %v2490_v9  }
 0x28d   :  { %2323 = vset.pattern.permute.xlu1 %v2390_v14 }
 0x28e   :  { %1433 = vperm.xlu1 %2323, %v2495_v10  }
 0x290   :  { %1396 = vperm.xlu0 %2321, %v2541_v36  }
 0x292   :  { %1401 = vperm.xlu1 %2323, %v2553_v38  }
 0x294   :  { %1438 = vperm.xlu0 %2321, %v2547_v37  }
 0x296   :  { %1443 = vperm.xlu1 %2323, %v2559_v39  }
 0x298   :  { %1406 = vperm.xlu0 %2321, %v1382_v35  }
 0x29a   :  { %1411 = vperm.xlu1 %2323, %v2747_v56  }
 0x29c   :  { %1448 = vperm.xlu0 %2321, %v2752_v11  }
 0x29e   :  { %1453 = vperm.xlu1 %2323, %v1425_v12  }
 0x2a0   :  { %1482 = vperm.xlu0 %2321, %v2523_v33   ;;  %v2775_v33 = vld [vmem:[%s3035_s9 + $0x38] sm:$0xff] }
 0x2a2   :  { %2324 = vset.pattern.permute.xlu1 %v2391_v58 }
 0x2a3   :  { %1564 = vperm.xlu1 %2324, %v2479_v8  }
 0x2a4   :  { %2326 = vset.pattern.permute.xlu0 %v2391_v58 }
 0x2a5   :  { %1559 = vperm.xlu0 %2326, %v2470_v5  }
 0x2a7   :  { %1615 = vperm.xlu1 %2324, %v2490_v9  }
 0x2a9   :  { %1620 = vperm.xlu0 %2326, %v2495_v10  }
 0x2ab   :  { %1569 = vperm.xlu1 %2324, %v2541_v36  }
 0x2ad   :  { %1574 = vperm.xlu0 %2326, %v2553_v38  }
 0x2af   :  { %2325 = vset.pattern.permute.xlu1 %v2390_v14  ;;  %v2782_v14 = vld [vmem:[%s3036_s10 + $0x38] sm:$0xff] }
 0x2b0   :  { %1477 = vperm.xlu1 %2325, %v2528_v34  }
 0x2b1   :  { %1579 = vperm.xlu0 %2326, %v1382_v35  }
 0x2b4   :  { %2327 = vset.pattern.permute.xlu1 %v2391_v58 }
 0x2b5   :  { %1625 = vperm.xlu1 %2327, %v2547_v37   ;;  %1640 = vperm.xlu0 %2326, %v1425_v12  }
 0x2b9   :  { %1630 = vperm.xlu1 %2327, %v2559_v39   ;;  %1594 = vperm.xlu0 %2326, %v2775_v33  }
 0x2bd   :  { %1584 = vperm.xlu1 %2327, %v2747_v56   ;;  %1650 = vperm.xlu0 %2326, %v2782_v14  }
 0x2c1   :  { %1635 = vperm.xlu1 %2327, %v2752_v11   ;;  %1679 = vperm.xlu0 %2326, %v2528_v34  }
 0x2c5   :  { %1589 = vperm.xlu1 %2327, %v2791_v59   ;;  %2329 = vset.pattern.permute.xlu0 %v2392_v61 }
 0x2c6   :  { %1771 = vperm.xlu0 %2329, %v2479_v8  }
 0x2c9   :  { %1645 = vperm.xlu1 %2327, %v1611_v62  }
 0x2ca   :  { %1776 = vperm.xlu0 %2329, %v2541_v36  }
 0x2cd   :  { %2328 = vset.pattern.permute.xlu1 %v2392_v61 }
 0x2ce   :  { %1766 = vperm.xlu1 %2328, %v2470_v5   ;;  %1846 = vperm.xlu0 %2329, %v2547_v37   ;;  %v2343_v5 = vld [vmem:[%s3030_s4] sm:$0xff]   ;;  %v2344_v37 = vld [vmem:[%s3030_s4 + $0x10] sm:$0xff]  }
 0x2d2   :  { %1836 = vperm.xlu1 %2328, %v2490_v9   ;;  %1786 = vperm.xlu0 %2329, %v1382_v35  }
 0x2d6   :  { %1841 = vperm.xlu1 %2328, %v2495_v10   ;;  %1861 = vperm.xlu0 %2329, %v1425_v12  }
 0x2da   :  { %1781 = vperm.xlu1 %2328, %v2553_v38   ;;  %v857_v8 = vpop.permute.xlu1 %856  ;;  %v794_v34 = vpop.permute.xlu0 %793  ;;  %1866 = vperm.xlu0 %2329, %v1611_v62  }
 0x2db   :  { %2194 = vmatpush3.bf16.msra.mxu0 %v794_v34  ;;  %2202 = vmatpush3.bf16.msra.mxu1 %v857_v8 }
 0x2dc   :  { %2215 = vmatprep.subr.bf16.mxu1 %v2378_v1  ;;  %2207 = vmatprep.subr.bf16.mxu0 %v2378_v1 }
 0x2de   :  { %1851 = vperm.xlu1 %2328, %v2559_v39   ;;  %2204 = vmatmul.mubr.msk.bf16.vlgmr.msra.gmra.mrb[20].mxu1 %vm804_vm8, %v2342_v63  ;;  %v983_v9 = vpop.permute.xlu1 %982  ;;  %v919_v10 = vpop.permute.xlu0 %918 }
 0x2df   :  { %2196 = vmatmul.mubr.msk.bf16.vlgmr.msra.gmra.mrb[20].mxu0 %vm804_vm8, %v2343_v5  ;;  %2216 = vmatpush3.bf16.msra.mxu1 %v983_v9 }
 0x2e0   :  { %2208 = vmatpush3.bf16.msra.mxu0 %v919_v10  ;;  %2211 = vmatprep.mubr.msk.bf16.mxu0 %vm2379_vm1, %v2378_v1 }
 0x2e1   :  { %2209 = vmatprep.subr.bf16.mxu0 %v2378_v1  ;;  %2217 = vmatprep.subr.bf16.mxu1 %v2378_v1 }
 0x2e2   :  { %v921_v36 = vpop.permute.xlu0 %920  ;;  %2219 = vmatprep.mubr.msk.bf16.mxu1 %vm2379_vm1, %v2378_v1  ;;  %1791 = vperm.xlu1 %2328, %v2747_v56   ;;  %v1101_v38 = vpop.permute.xlu1 %1100 }
 0x2e4   :  { %2210 = vmatpush3.bf16.msra.mxu0 %v921_v36 }
 0x2e5   :  { %2223 = vmatprep.subr.bf16.mxu0 %v2378_v1 }
 0x2e6   :  { %v985_v39 = vpop.permute.xlu0 %984  ;;  %2330 = vset.pattern.permute.xlu1 %v2391_v58  ;;  %v1103_v3 = vpop.permute.xlu1 %1102 }
 0x2e7   :  { %2212 = vmatmul.mubr.msk.bf16.vlgmr.msra.gmra.mrb[24].mxu0 %vm804_vm8, %v2344_v37  ;;  %2218 = vmatpush3.bf16.msra.mxu1 %v985_v39 }
 0x2e8   :  { %2224 = vmatpush3.bf16.msra.mxu0 %v2631_v7  ;;  %2231 = vmatprep.subr.bf16.mxu1 %v2378_v1  ;;  %v2347_v7 = vld [vmem:[%s3030_s4 + $0x28] sm:$0xff]  }
 0x2e9   :  { %2225 = vmatprep.subr.bf16.mxu0 %v2378_v1  ;;  %2227 = vmatprep.mubr.msk.bf16.mxu0 %vm2379_vm1, %v2378_v1 }
 0x2ea   :  { %2220 = vmatmul.mubr.msk.bf16.vlgmr.msra.gmra.mrb[24].mxu1 %vm804_vm8, %v2345_v0  ;;  %v1165_v4 = vpop.permute.xlu0 %1164  ;;  %1684 = vperm.xlu1 %2330, %v2834_v2   ;;  %v1229_v15 = vpop.permute.xlu1 %1228 }
 0x2eb   :  { %2232 = vmatpush3.bf16.msra.mxu1 %v1101_v38  ;;  %2235 = vmatprep.mubr.msk.bf16.mxu1 %vm2379_vm1, %v2378_v1 }
 0x2ec   :  { %2226 = vmatpush3.bf16.msra.mxu0 %v2699_v57  ;;  %2233 = vmatprep.subr.bf16.mxu1 %v2378_v1 }
 0x2ed   :  { %2239 = vmatprep.subr.bf16.mxu0 %v2378_v1 }
 0x2ee   :  { %2331 = vset.pattern.permute.xlu1 %v2392_v61  ;;  %v1167_v13 = vpop.permute.xlu0 %1166  ;;  %v1231_v21 = vpop.permute.xlu1 %1230 }
 0x2ef   :  { %2228 = vmatmul.mubr.msk.bf16.vlgmr.msra.gmra.mrb[28].mxu0 %vm804_vm8, %v2346_v6  ;;  %2234 = vmatpush3.bf16.msra.mxu1 %v1103_v3 }
 0x2f0   :  { %2240 = vmatpush3.bf16.msra.mxu0 %v1165_v4  ;;  %2247 = vmatprep.subr.bf16.mxu1 %v2378_v1 }
 0x2f1   :  { %2241 = vmatprep.subr.bf16.mxu0 %v2378_v1  ;;  %2243 = vmatprep.mubr.msk.bf16.mxu0 %vm2379_vm1, %v2378_v1 }
 0x2f2   :  { %2236 = vmatmul.mubr.msk.bf16.vlgmr.msra.gmra.mrb[28].mxu1 %vm804_vm8, %v2347_v7  ;;  %1856 = vperm.xlu1 %2331, %v2752_v11   ;;  %v1293_v20 = vpop.permute.xlu0 %1292 }
 0x2f3   :  { %2248 = vmatpush3.bf16.msra.mxu1 %v1229_v15  ;;  %2251 = vmatprep.mubr.msk.bf16.mxu1 %vm2379_vm1, %v2378_v1 }
 0x2f4   :  { %2242 = vmatpush3.bf16.msra.mxu0 %v1167_v13  ;;  %2249 = vmatprep.subr.bf16.mxu1 %v2378_v1 }
 0x2f5   :  { %2255 = vmatprep.subr.bf16.mxu0 %v2378_v1 }
 0x2f6   :  { %1796 = vperm.xlu1 %2331, %v2791_v59   ;;  %v1295_v25 = vpop.permute.xlu0 %1294 }
 0x2f7   :  { %2244 = vmatmul.mubr.msk.bf16.vlgmr.msra.gmra.mrb[32].mxu0 %vm804_vm8, %v2348_v19  ;;  %2250 = vmatpush3.bf16.msra.mxu1 %v1231_v21 }
 0x2f8   :  { %2256 = vmatpush3.bf16.msra.mxu0 %v1293_v20  ;;  %2259 = vmatprep.mubr.msk.bf16.mxu0 %vm2379_vm1, %v2378_v1 }
 0x2f9   :  { %2257 = vmatprep.subr.bf16.mxu0 %v2378_v1  ;;  %2263 = vmatprep.subr.bf16.mxu1 %v2378_v1 }
 0x2fa   :  { %2252 = vmatmul.mubr.msk.bf16.vlgmr.msra.gmra.mrb[32].mxu1 %vm804_vm8, %v2349_v24  ;;  %1801 = vperm.xlu1 %2331, %v2775_v33  }
 0x2fb   :  { %2269 = vmatprep.mubr.msk.bf16.mxu1 %vm2379_vm1, %v2378_v1 }
 0x2fc   :  { %2258 = vmatpush3.bf16.msra.mxu0 %v1295_v25 }
 0x2fd   :  { %2273 = vmatprep.subr.bf16.mxu0 %v2378_v1 }
 0x2fe   :  { %1871 = vperm.xlu1 %2331, %v2782_v14  }
 0x2ff   :  { %2260 = vmatmul.mubr.msk.bf16.vlgmr.msra.gmra.mrb[36].mxu0 %vm804_vm8, %v2350_v26  ;;  %v1387_v27 = vpop.permute.xlu1 %1386 }
 0x300   :  { %2281 = vmatprep.mubr.msk.bf16.mxu0 %vm2379_vm1, %v2378_v1  ;;  %v1414_v31 = vmul.f32 %v1387_v27, %v2506_v22 }
 0x304   :  { %v2889_v28 = vpop.permute.xlu1 %1357 }
 0x307   :  { %v1392_v29 = vpop.permute.xlu0 %1391 }
 0x308   :  { %v2891_v30 = vpop.permute.xlu1 %1362  ;;  %v1415_v44 = vmul.f32 %v1392_v29, %v2508_v23 }
 0x30b   :  { %v1429_v43 = vpop.permute.xlu0 %1428 }
 0x30c   :  { %v1456_v48 = vadd.f32 %v1429_v43, %v1414_v31 }
 0x30d   :  { %v1434_v49 = vpop.permute.xlu1 %1433 }
 0x30e   :  { %v1457_v50 = vadd.f32 %v1434_v49, %v1415_v44  ;;  %v1462_v53 = vmax.f32 %v1456_v48, 0.0 }
 0x30f   :  { %v1397_v52 = vpop.permute.xlu0 %1396 }
 0x310   :  { %v1463_v54 = vmax.f32 %v1457_v50, 0.0  ;;  %v1416_v35 = vmul.f32 %v1397_v52, %v2691_v46 }
 0x311   :  { %v1402_v55 = vpop.permute.xlu1 %1401 }
 0x312   :  { %v1468_v57 = vpack.c.bf16 %v1463_v54, %v1462_v53  ;;  %v1417_v11 = vmul.f32 %v1402_v55, %v2693_v47 }
 0x313   :  { %v1439_v56 = vpop.permute.xlu0 %1438 }
 0x314   :  { %v1458_v12 = vadd.f32 %v1439_v56, %v1416_v35  ;;  %2264 = vmatpush3.bf16.msra.mxu1 %v1468_v57 }
 0x315   :  { %v1444_v58 = vpop.permute.xlu1 %1443  ;;  %2265 = vmatprep.subr.bf16.mxu1 %v2378_v1 }
 0x316   :  { %v1459_v33 = vadd.f32 %v1444_v58, %v1417_v11  ;;  %v1464_v59 = vmax.f32 %v1458_v12, 0.0 }
 0x317   :  { %v2898_v14 = vpop.permute.xlu0 %1406 }
 0x318   :  { %v1465_v61 = vmax.f32 %v1459_v33, 0.0 }
 0x319   :  { %v2900_v62 = vpop.permute.xlu1 %1411 }
 0x31a   :  { %v1469_v8 = vpack.c.bf16 %v1465_v61, %v1464_v59 }
 0x31b   :  { %v2902_v34 = vpop.permute.xlu0 %1448 }
 0x31c   :  { %2266 = vmatpush3.bf16.msra.mxu1 %v1469_v8 }
 0x31d   :  { %v2904_v63 = vpop.permute.xlu1 %1453  ;;  %2267 = vmatprep.subr.bf16.mxu1 %v2378_v1 }
 0x31f   :  { %v2907_v5 = vpop.permute.xlu0 %1482 }
 0x322   :  { %v1565_v9 = vpop.permute.xlu1 %1564 }
 0x323   :  { %v1598_v38 = vmul.f32 %v1565_v9, %v2508_v23 }
 0x324   :  { %v1560_v10 = vpop.permute.xlu0 %1559 }
 0x325   :  { %v1597_v36 = vmul.f32 %v1560_v10, %v2506_v22 }
 0x326   :  { %v1616_v37 = vpop.permute.xlu1 %1615 }
 0x327   :  { %v1653_v39 = vadd.f32 %v1616_v37, %v1597_v36 }
 0x328   :  { %v1621_v0 = vpop.permute.xlu0 %1620 }
 0x329   :  { %v1654_v3 = vadd.f32 %v1621_v0, %v1598_v38  ;;  %v1661_v4 = vmax.f32 %v1653_v39, 0.0 }
 0x32a   :  { %v1570_v7 = vpop.permute.xlu1 %1569 }
 0x32b   :  { %v1662_v6 = vmax.f32 %v1654_v3, 0.0  ;;  %v1599_v21 = vmul.f32 %v1570_v7, %v2691_v46 }
 0x32c   :  { %v1575_v19 = vpop.permute.xlu0 %1574 }
 0x32d   :  { %v1669_v13 = vpack.c.bf16 %v1662_v6, %v1661_v4  ;;  %v1600_v24 = vmul.f32 %v1575_v19, %v2693_v47 }
 0x32f   :  { %2274 = vmatpush3.bf16.msra.mxu0 %v1669_v13  ;;  %v2911_v15 = vpop.permute.xlu1 %1477 }
 0x330   :  { %2275 = vmatprep.subr.bf16.mxu0 %v2378_v1  ;;  %v2921_v49 = vpop.permute.xlu0 %1579 }
 0x334   :  { %v1626_v20 = vpop.permute.xlu1 %1625  ;;  %v2929_v8 = vpop.permute.xlu0 %1640 }
 0x335   :  { %v1655_v25 = vadd.f32 %v1626_v20, %v1599_v21 }
 0x337   :  { %v1663_v29 = vmax.f32 %v1655_v25, 0.0 }
 0x338   :  { %v1631_v26 = vpop.permute.xlu1 %1630  ;;  %v2934_v39 = vpop.permute.xlu0 %1594 }
 0x339   :  { %v1656_v27 = vadd.f32 %v1631_v26, %v1600_v24 }
 0x33b   :  { %v1664_v31 = vmax.f32 %v1656_v27, 0.0 }
 0x33c   :  { %v2917_v44 = vpop.permute.xlu1 %1584 }
 0x33d   :  { %v1670_v43 = vpack.c.bf16 %v1664_v31, %v1663_v29  ;;  %v2941_v29 = vpop.permute.xlu0 %1650 }
 0x33f   :  { %2276 = vmatpush3.bf16.msra.mxu0 %v1670_v43 }
 0x340   :  { %2277 = vmatprep.subr.bf16.mxu0 %v2378_v1  ;;  %v2919_v48 = vpop.permute.xlu1 %1635 }
 0x344   :  { %v2923_v50 = vpop.permute.xlu1 %1589 }
 0x348   :  { %v2931_v10 = vpop.permute.xlu1 %1645 }
 0x34d   :  { %v2937_v7 = vpop.permute.xlu1 %1766 }
 0x3b1   :  { %v904_v52 = vpop.f32.mrb[20].mxu1 }
 0x3b2   :  { %v842_v53 = vpop.f32.mrb[20].mxu0  ;;  %v911_v54 = vmul.f32 %v904_v52, %v2646_v40  ;;  %v2205_v55 = vpop.f32.mrb[21].mxu1 }
 0x3b3   :  { %v849_v57 = vmul.f32 %v842_v53, %v2653_v42  ;;  %v2197_v35 = vpop.f32.mrb[21].mxu0  ;;  %v907_v56 = vpop.f32.mrb[22].mxu1 }
 0x3b4   :  { %v845_v11 = vpop.f32.mrb[22].mxu0  ;;  %v912_v12 = vmul.f32 %v907_v56, %v2646_v40  ;;  %v2206_v58 = vpop.f32.mrb[23].mxu1 }
 0x3b5   :  { %v913_v33 = vadd.f32 %v911_v54, %v849_v57  ;;  %v850_v59 = vmul.f32 %v845_v11, %v2653_v42  ;;  %v2198_v61 = vpop.f32.mrb[23].mxu0  ;;  %v2945_v58 = vpop.permute.xlu0 %1679 }
 0x3b7   :  { %v914_v9 = vadd.f32 %v912_v12, %v850_v59 }
 0x3ba   :  { %v968_v36 = vpop.f32.mrb[24].mxu0 }
 0x3bb   :  { %v975_v37 = vmul.f32 %v968_v36, %v2664_v60  ;;  %v2213_v38 = vpop.f32.mrb[25].mxu0 }
 0x3bc   :  { %v971_v0 = vpop.f32.mrb[26].mxu0 }
 0x3bd   :  { %v977_v3 = vadd.f32 %v975_v37, %v913_v33  ;;  %v976_v40 = vmul.f32 %v971_v0, %v2664_v60  ;;  %v2214_v4 = vpop.f32.mrb[27].mxu0  ;;  %v1032_v6 = vpop.f32.mrb[24].mxu1 }
 0x3be   :  { %v1039_v42 = vmul.f32 %v1032_v6, %v2649_v41  ;;  %v2221_v13 = vpop.f32.mrb[25].mxu1  ;;  %v1837_v60 = vpop.permute.xlu1 %1836 }
 0x3bf   :  { %v978_v19 = vadd.f32 %v976_v40, %v914_v9  ;;  %v1035_v20 = vpop.f32.mrb[26].mxu1 }
 0x3c0   :  { %v1040_v21 = vmul.f32 %v1035_v20, %v2649_v41  ;;  %v2222_v24 = vpop.f32.mrb[27].mxu1  ;;  %v1041_v25 = vadd.f32 %v1039_v42, %v977_v3  ;;  %v1772_v42 = vpop.permute.xlu0 %1771 }
 0x3c2   :  { %v1088_v26 = vpop.f32.mrb[28].mxu0  ;;  %v1042_v27 = vadd.f32 %v1040_v21, %v978_v19  ;;  %v1842_v33 = vpop.permute.xlu1 %1841 }
 0x3c3   :  { %v1095_v31 = vadd.f32 %v1088_v26, %v1041_v25  ;;  %v2229_v43 = vpop.f32.mrb[29].mxu0 }
 0x3c4   :  { %v1091_v52 = vpop.f32.mrb[30].mxu0 }
 0x3c5   :  { %v1096_v53 = vadd.f32 %v1091_v52, %v1042_v27  ;;  %v2230_v54 = vpop.f32.mrb[31].mxu0  ;;  %v1150_v55 = vpop.f32.mrb[28].mxu1 }
 0x3c6   :  { %v1157_v57 = vmul.f32 %v1150_v55, %v2658_v51  ;;  %v2237_v35 = vpop.f32.mrb[29].mxu1  ;;  %v1782_v19 = vpop.permute.xlu1 %1781 }
 0x3c7   :  { %v1153_v56 = vpop.f32.mrb[30].mxu1  ;;  %v1777_v54 = vpop.permute.xlu0 %1776 }
 0x3c8   :  { %v1159_v11 = vadd.f32 %v1157_v57, %v1095_v31  ;;  %v1158_v41 = vmul.f32 %v1153_v56, %v2658_v51  ;;  %v2238_v12 = vpop.f32.mrb[31].mxu1 }
 0x3ca   :  { %v1160_v59 = vadd.f32 %v1158_v41, %v1096_v53  ;;  %v1214_v61 = vpop.f32.mrb[32].mxu0  ;;  %v1852_v55 = vpop.permute.xlu1 %1851 }
 0x3cb   :  { %v1221_v9 = vmul.f32 %v1214_v61, %v2677_v32  ;;  %v2245_v36 = vpop.f32.mrb[33].mxu0  ;;  %v1847_v41 = vpop.permute.xlu0 %1846  ;;  %v1815_v61 = vmul.f32 %v1772_v42, %v2508_v23 }
 0x3cc   :  { %v1217_v37 = vpop.f32.mrb[34].mxu0 }
 0x3cd   :  { %v1223_v38 = vadd.f32 %v1221_v9, %v1159_v11  ;;  %v1222_v0 = vmul.f32 %v1217_v37, %v2677_v32  ;;  %v2246_v3 = vpop.f32.mrb[35].mxu0  ;;  %v1278_v40 = vpop.f32.mrb[32].mxu1  ;;  %v1814_v37 = vmul.f32 %v2937_v7, %v2506_v22  ;;  %v1816_v7 = vmul.f32 %v1777_v54, %v2691_v46  ;;  %v1833_v54 = vld [vmem:[%s3036_s10 + $0x48] sm:$0xff] }
 0x3ce   :  { %v1285_v4 = vmul.f32 %v1278_v40, %v2672_v45  ;;  %v2253_v6 = vpop.f32.mrb[33].mxu1  ;;  %v1792_v11 = vpop.permute.xlu1 %1791 }
 0x3cf   :  { %v1224_v51 = vadd.f32 %v1222_v0, %v1160_v59  ;;  %v1281_v13 = vpop.f32.mrb[34].mxu1  ;;  %v1787_v0 = vpop.permute.xlu0 %1786 }
 0x3d0   :  { %v1287_v20 = vadd.f32 %v1285_v4, %v1223_v38  ;;  %v1286_v21 = vmul.f32 %v1281_v13, %v2672_v45  ;;  %v2254_v24 = vpop.f32.mrb[35].mxu1  ;;  %v1885_v38 = vadd.f32 %v1842_v33, %v1815_v61 }
 0x3d2   :  { %v1288_v25 = vadd.f32 %v1286_v21, %v1224_v51  ;;  %v1342_v26 = vpop.f32.mrb[36].mxu0  ;;  %v1895_v33 = vmax.f32 %v1885_v38, 0.0 }
 0x3d3   :  { %v1349_v27 = vmul.f32 %v1342_v26, %v2685_v16  ;;  %v2261_v31 = vpop.f32.mrb[37].mxu0 }
 0x3d4   :  { %v1345_v43 = vpop.f32.mrb[38].mxu0 }
 0x3d5   :  { %v1351_v32 = vadd.f32 %v1349_v27, %v1287_v20  ;;  %v1350_v52 = vmul.f32 %v1345_v43, %v2685_v16  ;;  %v2262_v53 = vpop.f32.mrb[39].mxu0 }
 0x3d6   :  { %v1832_v53 = vld [vmem:[%s3036_s10 + $0x40] sm:$0xff] }
 0x3d7   :  { %v1352_v57 = vadd.f32 %v1350_v52, %v1288_v25  ;;  %v1365_v35 = vadd.f32 %v2889_v28, %v1351_v32  ;;  %v2961_v28 = vpop.permute.xlu1 %1684  ;;  %v1762_v32 = vld [vmem:[%s3035_s9 + $0x40] sm:$0xff]  ;;  %v1763_v52 = vld [vmem:[%s3035_s9 + $0x48] sm:$0xff] }
 0x3d8   :  { %1806 = vperm.xlu0 %2329, %v1762_v32   ;;  %1811 = vperm.xlu1 %2331, %v1763_v52  }
 0x3d9   :  { %v1366_v56 = vadd.f32 %v2891_v30, %v1352_v57 }
 0x3db   :  { %v1367_v45 = vpack.c.bf16 %v1366_v56, %v1365_v35  ;;  %v1857_v20 = vpop.permute.xlu1 %1856 }
 0x3dc   :  { %1876 = vperm.xlu0 %2329, %v1832_v53   ;;  %1881 = vperm.xlu1 %2331, %v1833_v54  }
 0x3dd   :  { %v1377_v12 = vunpack.c.h.bf16 %v1367_v45  ;;  %v1376_v59 = vunpack.c.l.bf16 %v1367_v45 }
 0x3df   :  { %v1419_v9 = vmul.f32 %v2900_v62, %v1377_v12  ;;  %v1602_v36 = vmul.f32 %v2917_v44, %v1377_v12  ;;  %v1418_v16 = vmul.f32 %v2898_v14, %v1376_v59  ;;  %v1601_v30 = vmul.f32 %v2921_v49, %v1376_v59  ;;  %v1797_v57 = vpop.permute.xlu1 %1796 }
 0x3e0   :  { %v1884_v62 = vadd.f32 %v1837_v60, %v1814_v37  ;;  %v1817_v14 = vmul.f32 %v1782_v19, %v2693_v47  ;;  %v1819_v51 = vmul.f32 %v1792_v11, %v1377_v12  ;;  %v1818_v13 = vmul.f32 %v1787_v0, %v1376_v59  ;;  %1920 = vperm.xlu1 %2331, %v2834_v2  }
 0x3e1   :  { %v1460_v3 = vadd.f32 %v2902_v34, %v1418_v16  ;;  %v1461_v40 = vadd.f32 %v2904_v63, %v1419_v9  ;;  %v1658_v23 = vadd.f32 %v2929_v8, %v1602_v36  ;;  %v1657_v44 = vadd.f32 %v2919_v48, %v1601_v30  ;;  %v1862_v63 = vpop.permute.xlu0 %1861  ;;  %v2351_v48 = vld [vmem:[%s3031_s5] sm:$0xff]  }
 0x3e2   :  { %v1887_v49 = vadd.f32 %v1852_v55, %v1817_v14  ;;  %v1886_v8 = vadd.f32 %v1847_v41, %v1816_v7  ;;  %v1894_v47 = vmax.f32 %v1884_v62, 0.0  ;;  %v1888_v19 = vadd.f32 %v1857_v20, %v1818_v13  ;;  %v1911_v55 = vld [vmem:[%s3034_s8] sm:$0xff] }
 0x3e3   :  { %v1466_v4 = vmax.f32 %v1460_v3, 0.0  ;;  %v1467_v6 = vmax.f32 %v1461_v40, 0.0  ;;  %v1666_v22 = vmax.f32 %v1658_v23, 0.0  ;;  %v1665_v42 = vmax.f32 %v1657_v44, 0.0  ;;  %1915 = vperm.xlu0 %2329, %v1911_v55   ;;  %v1802_v45 = vpop.permute.xlu1 %1801 }
 0x3e4   :  { %v1904_v46 = vpack.c.bf16 %v1895_v33, %v1894_v47  ;;  %v1897_v60 = vmax.f32 %v1887_v49, 0.0  ;;  %v1889_v24 = vadd.f32 %v1862_v63, %v1819_v51  ;;  %v1896_v25 = vmax.f32 %v1886_v8, 0.0 }
 0x3e5   :  { %v1470_v34 = vpack.c.bf16 %v1467_v6, %v1466_v4  ;;  %v1671_v21 = vpack.c.bf16 %v1666_v22, %v1665_v42  ;;  %v1898_v27 = vmax.f32 %v1888_v19, 0.0  ;;  %v1867_v37 = vpop.permute.xlu0 %1866 }
 0x3e6   :  { %v1905_v26 = vpack.c.bf16 %v1897_v60, %v1896_v25  ;;  %v1899_v31 = vmax.f32 %v1889_v24, 0.0 }
 0x3e7   :  { %2268 = vmatpush3.bf16.msra.mxu1 %v1470_v34  ;;  %2278 = vmatpush3.bf16.msra.mxu0 %v1671_v21  ;;  %v1872_v16 = vpop.permute.xlu1 %1871 }
 0x3e8   :  { %2285 = vmatprep.subr.bf16.mxu1 %v2378_v1  ;;  %2279 = vmatprep.subr.bf16.mxu0 %v2378_v1  ;;  %v1906_v43 = vpack.c.bf16 %v1899_v31, %v1898_v27 }
 0x3ea   :  { %2270 = vmatmul.mubr.msk.bf16.vlgmr.msra.gmra.mrb[36].mxu1 %vm1490_vm9, %v2351_v48 }
 0x3eb   :  { %2286 = vmatpush3.bf16.msra.mxu1 %v1904_v46  ;;  %2295 = vmatprep.mubr.msk.bf16.mxu1 %vm2379_vm1, %v2378_v1 }
 0x3ec   :  { %2287 = vmatprep.subr.bf16.mxu1 %v2378_v1 }
 0x3ef   :  { %2288 = vmatpush3.bf16.msra.mxu1 %v1905_v26 }
 0x3f0   :  { %2289 = vmatprep.subr.bf16.mxu1 %v2378_v1 }
 0x3f3   :  { %2290 = vmatpush3.bf16.msra.mxu1 %v1906_v43 }
 0x3f4   :  { %2291 = vmatprep.subr.bf16.mxu1 %v2378_v1 }
 0x457   :  { %v1807_v42 = vpop.permute.xlu0 %1806  ;;  %v1812_v49 = vpop.permute.xlu1 %1811 }
 0x45b   :  { %v1877_v21 = vpop.permute.xlu0 %1876  ;;  %v1882_v48 = vpop.permute.xlu1 %1881 }
 0x45f   :  { %v1921_v26 = vpop.permute.xlu1 %1920 }
 0x4bd   :  { %v1528_v35 = vpop.f32.mrb[36].mxu1 }
 0x4be   :  { %v2271_v56 = vpop.f32.mrb[37].mxu1  ;;  %v1529_v41 = vadd.f32 %v1528_v35, %v2911_v15 }
 0x4bf   :  { %v1531_v11 = vpop.f32.mrb[38].mxu1 }
 0x4c0   :  { %v1532_v12 = vadd.f32 %v1531_v11, %v2907_v5  ;;  %v2272_v59 = vpop.f32.mrb[39].mxu1 }
 0x4c2   :  { %v1535_v61 = vpack.c.bf16 %v1532_v12, %v1529_v41 }
 0x4c4   :  { %v1548_v9 = vunpack.c.h.bf16 %v1535_v61  ;;  %v1547_v36 = vunpack.c.l.bf16 %v1535_v61 }
 0x4c6   :  { %v1604_v38 = vmul.f32 %v2934_v39, %v1548_v9  ;;  %v1821_v30 = vmul.f32 %v1802_v45, %v1548_v9  ;;  %v1603_v2 = vmul.f32 %v2923_v50, %v1547_v36  ;;  %v1820_v0 = vmul.f32 %v1797_v57, %v1547_v36  ;;  %v2352_v39 = vld [vmem:[%s3032_s6] sm:$0xff]  }
 0x4c8   :  { %v1660_v3 = vadd.f32 %v2941_v29, %v1604_v38  ;;  %v1891_v40 = vadd.f32 %v1872_v16, %v1821_v30  ;;  %v1659_v23 = vadd.f32 %v2931_v10, %v1603_v2  ;;  %v1890_v15 = vadd.f32 %v1867_v37, %v1820_v0 }
 0x4ca   :  { %v1668_v62 = vmax.f32 %v1660_v3, 0.0  ;;  %v1901_v5 = vmax.f32 %v1891_v40, 0.0  ;;  %v1667_v44 = vmax.f32 %v1659_v23, 0.0  ;;  %v1900_v14 = vmax.f32 %v1890_v15, 0.0 }
 0x4cc   :  { %v1907_v4 = vpack.c.bf16 %v1901_v5, %v1900_v14  ;;  %v1672_v6 = vpack.c.bf16 %v1668_v62, %v1667_v44 }
 0x4ce   :  { %2280 = vmatpush3.bf16.msra.mxu0 %v1672_v6  ;;  %2292 = vmatpush3.bf16.msra.mxu1 %v1907_v4 }
 0x4cf   :  { %2293 = vmatprep.subr.bf16.mxu1 %v2378_v1 }
 0x4d1   :  { %2282 = vmatmul.mubr.msk.bf16.vlgmr.msra.gmra.mrb[40].mxu0 %vm1692_vm10, %v2352_v39 }
 0x5a4   :  { %v1730_v50 = vpop.f32.mrb[40].mxu0 }
 0x5a5   :  { %v2283_v29 = vpop.f32.mrb[41].mxu0  ;;  %v1731_v22 = vadd.f32 %v1730_v50, %v2945_v58  ;;  %v2353_v58 = vld [vmem:[%s3033_s7] sm:$0xff]   ;;  %s2354_s7 = scalar_lea.vmem %s1983_s14, 256 }
 0x5a6   :  { %v1733_v10 = vpop.f32.mrb[42].mxu0  ;;  %p2355_p0 = scmp.ne.s32.totalorder %s1983_s14, %s2354_s7  ;;  %p2360_p2 = scmp.lt.s32.totalorder %s2354_s7, %s2354_s7 }
 0x5a7   :  { %v1734_v7 = vadd.f32 %v1733_v10, %v2961_v28  ;;  %v2284_v33 = vpop.f32.mrb[43].mxu0  ;;  %v1916_v28 = vpop.permute.xlu0 %1915 }
 0x5a8   :  { %p2361_p3 = por %p2360_p2, %p2359_p1 }
 0x5a9   :  { %v1737_v51 = vpack.c.bf16 %v1734_v7, %v1731_v22 }
 0x5aa   :  { %p2362_p4 = pnand %p2361_p3, %p2355_p0 }
 0x5ab   :  { %v1752_v13 = vunpack.c.l.bf16 %v1737_v51  ;;  %v1753_v34 = vunpack.c.h.bf16 %v1737_v51 }
 0x5ad   :  { %v1822_v20 = vmul.f32 %v1807_v42, %v1752_v13  ;;  %v1823_v63 = vmul.f32 %v1812_v49, %v1753_v34 }
 0x5af   :  { %v1892_v8 = vadd.f32 %v1877_v21, %v1822_v20  ;;  %v1893_v1 = vadd.f32 %v1882_v48, %v1823_v63 }
 0x5b1   :  { %v1902_v47 = vmax.f32 %v1892_v8, 0.0  ;;  %v1903_v46 = vmax.f32 %v1893_v1, 0.0 }
 0x5b3   :  { %v1908_v60 = vpack.c.bf16 %v1903_v46, %v1902_v47 }
 0x5b5   :  { %2294 = vmatpush3.bf16.msra.mxu1 %v1908_v60 }
 0x5b8   :  { %2296 = vmatmul.mubr.msk.bf16.vlgmr.msra.gmra.mrb[40].mxu1 %vm1928_vm11, %v2353_v58 }
 0x68b   :  { %v1966_v19 = vpop.f32.mrb[40].mxu1 }
 0x68c   :  { %v1967_v24 = vadd.f32 %v1966_v19, %v1916_v28  ;;  %v2297_v25 = vpop.f32.mrb[41].mxu1 }
 0x68d   :  { %v1969_v27 = vpop.f32.mrb[42].mxu1 }
 0x68e   :  { %v1973_v31 = vadd.f32 %v1967_v24, %v2500_v17  ;;  %v1970_v43 = vadd.f32 %v1969_v27, %v1921_v26  ;;  %v2298_v32 = vpop.f32.mrb[43].mxu1 }
 0x690   :  { %1975 = vst [vmem:[#allocation3] sm:$0xff] %v1973_v31  ;;  %v1974_v52 = vadd.f32 %v1970_v43, %v2502_v18 }
 0x692   :  { %1976 = vst [vmem:[#allocation3 + $0x8] sm:$0xff] %v1974_v52 }
 0x693   :  { %2365 = shalt.err (!%p2362_p4)
}
 0x694   :  { %s2366_s17 = scalar_lea.hbm %s3037_s11, 256 }
 0x695   :  { %p2367_p5 = scmp.ne.s32.totalorder %s3037_s11, %s2366_s17  ;;  %p2370_p6 = scmp.lt.u32.totalorder %s2366_s17, %s3037_s11 }
 0x697   :  { %p2372_p7 = pnand %p2370_p6, %p2367_p5 }
 0x699   :  { %2375 = shalt.err (!%p2372_p7)
}
 0x69a   :  { %s2394_s23 = smov 128  }
 0x69b   :  { %1988 = dma.vmem_to_hbm [thread:$0]  %s1983_s14, 256, %s3037_s11, [#allocation4], %s2394_s23, %s2394_s23, %s2381_s30  }
 0x69c   :  { %2376 = dma.done.wait [#allocation4], 256  }
 0x69d   :  { %2377 = vsyncadd [#allocation4], 4294967040 }
 0x69e   :  { %1992 = vsyncpa [#allocation4], 1 }

</bundles_post_ra>
